<compile_context>
chip_gen: v6e
topology: v6e:2x2x1
jax: 0.10.0
libtpu: 0.0.40
codegen_flags: <defaults>
</compile_context>

<pallas_src>
import functools

import jax
import jax.numpy as jnp
from jax.experimental import pallas as pl
from jax.experimental.pallas import tpu as pltpu


# ---------------------------------------------------------------------------
# Fused attention kernel: one grid step == one batch element, all heads inside.
# ---------------------------------------------------------------------------
def _attention_kernel(x_ref, wqkv_ref, wproj_ref, bproj_ref,
                      out_ref, attn_ref, ctx_ref, *, num_heads, scale):
    n, c = x_ref.shape
    d = c // num_heads

    x = x_ref[...].astype(jnp.float32)            # (N, C)
    w_qkv = wqkv_ref[...].astype(jnp.float32)     # (3C, C)  torch (out, in) layout
    w_proj = wproj_ref[...].astype(jnp.float32)   # (C, C)   torch (out, in) layout

    # qkv projection: contract x's feature axis with the weight's in_features
    # (last) axis -> equivalent to x @ W.T without any runtime transpose/copy.
    qkv = jax.lax.dot_general(
        x, w_qkv, (((1,), (1,)), ((), ())),
        preferred_element_type=jnp.float32)        # (N, 3C) = [q | k | v]

    # Per-head attention, heads statically unrolled inside this single kernel
    # invocation (no per-head grid-step overhead).  All dots are plain 2-D MXU ops.
    for h in range(num_heads):
        q_h = qkv[:, h * d:(h + 1) * d]                      # (N, D)
        k_h = qkv[:, c + h * d:c + (h + 1) * d]              # (N, D)
        v_h = qkv[:, 2 * c + h * d:2 * c + (h + 1) * d]      # (N, D)

        # scores = (q @ k.T) * scale, contracting the head dim of both operands.
        s = jax.lax.dot_general(
            q_h, k_h, (((1,), (1,)), ((), ())),
            preferred_element_type=jnp.float32) * scale       # (N, N)

        # softmax over keys (max-subtracted, exact divide to match torch numerics)
        s = s - jnp.max(s, axis=-1, keepdims=True)
        e = jnp.exp(s)
        p = e / jnp.sum(e, axis=-1, keepdims=True)            # (N, N)

        attn_ref[h] = p.astype(attn_ref.dtype)
        # TODO(synk): attn_drop is nn.Dropout(0.0) -> identity; not implemented.
        ctx_ref[:, h * d:(h + 1) * d] = jnp.dot(
            p, v_h, preferred_element_type=jnp.float32)       # (N, D)

    # Output projection + bias (again contracting the weight's in_features axis).
    out = jax.lax.dot_general(
        ctx_ref[...], w_proj, (((1,), (1,)), ((), ())),
        preferred_element_type=jnp.float32) + bproj_ref[...].astype(jnp.float32)
    out_ref[...] = out.astype(out_ref.dtype)


def attention_forward(x, w_qkv, w_proj, b_proj, *, num_heads, scale=None):
    """PyTorch Attention.forward.

    x:      (B, N, C)
    w_qkv:  (3C, C)  nn.Linear(dim, 3*dim, bias=False).weight  (torch layout)
    w_proj: (C, C)   nn.Linear(dim, dim).weight                (torch layout)
    b_proj: (C,)     nn.Linear(dim, dim).bias
    returns (out (B, N, C), attn (B, H, N, N))
    """
    B, N, C = x.shape
    H = num_heads
    D = C // H
    scale = scale if scale is not None else D ** -0.5

    kernel = functools.partial(_attention_kernel, num_heads=H, scale=scale)
    out, attn = pl.pallas_call(
        kernel,
        grid=(B,),
        in_specs=[
            pl.BlockSpec((None, N, C), lambda b: (b, 0, 0)),       # x: one batch / step
            pl.BlockSpec((3 * C, C), lambda b: (0, 0)),            # qkv weight (resident)
            pl.BlockSpec((C, C), lambda b: (0, 0)),                # proj weight (resident)
            pl.BlockSpec((1, C), lambda b: (0, 0)),                # proj bias
        ],
        out_specs=(
            pl.BlockSpec((None, N, C), lambda b: (b, 0, 0)),       # out
            pl.BlockSpec((None, H, N, N), lambda b: (b, 0, 0, 0)),  # attention probs
        ),
        out_shape=(
            jax.ShapeDtypeStruct((B, N, C), x.dtype),
            jax.ShapeDtypeStruct((B, H, N, N), x.dtype),
        ),
        scratch_shapes=[pltpu.VMEM((N, C), jnp.float32)],          # per-head context slab
        compiler_params=pltpu.CompilerParams(
            dimension_semantics=("parallel",),       # batch axis -> both TCs on v7x
            vmem_limit_bytes=32 * 1024 * 1024,       # <= 64 MiB v7x physical VMEM
        ),
    )(x, w_qkv, w_proj, b_proj.reshape(1, C))
    return out, attn


# ---------------------------------------------------------------------------
# Pure-JAX reference mirroring the PyTorch module exactly (for verification).
# ---------------------------------------------------------------------------
def attention_reference(x, w_qkv, w_proj, b_proj, num_heads, scale):
    B, N, C = x.shape
    D = C // num_heads
    hp = jax.lax.Precision.HIGHEST
    qkv = jnp.einsum("bnc,kc->bnk", x, w_qkv, precision=hp)
    qkv = qkv.reshape(B, N, 3, num_heads, D).transpose(2, 0, 3, 1, 4)
    q, k, v = qkv[0], qkv[1], qkv[2]
    attn = jnp.einsum("bhqd,bhkd->bhqk", q, k, precision=hp) * scale
    attn = jax.nn.softmax(attn, axis=-1)
    out = jnp.einsum("bhqk,bhkd->bhqd", attn, v, precision=hp)
    out = out.transpose(0, 2, 1, 3).reshape(B, N, C)
    out = jnp.einsum("bnc,oc->bno", out, w_proj, precision=hp) + b_proj
    return out, attn


if __name__ == "__main__":
    key = jax.random.PRNGKey(0)
    kx, kqkv, kproj, kb = jax.random.split(key, 4)

    # Small shapes consistent with the module: dim divisible by num_heads.
    B, N, C, H = 2, 16, 128, 8
    D = C // H

    x = jax.random.normal(kx, (B, N, C), jnp.float32)
    # nn.Linear weights in PyTorch (out_features, in_features) layout, trunc-normal std=0.02.
    w_qkv = 0.02 * jax.random.truncated_normal(kqkv, -2.0, 2.0, (3 * C, C), jnp.float32)
    w_proj = 0.02 * jax.random.truncated_normal(kproj, -2.0, 2.0, (C, C), jnp.float32)
    b_proj = 0.02 * jax.random.truncated_normal(kb, -2.0, 2.0, (C,), jnp.float32)

    fwd = jax.jit(functools.partial(attention_forward, num_heads=H))
    out, attn = fwd(x, w_qkv, w_proj, b_proj)
    jax.block_until_ready((out, attn))

    out_ref, attn_ref = attention_reference(x, w_qkv, w_proj, b_proj, H, D ** -0.5)

    assert out.shape == (B, N, C), out.shape
    assert attn.shape == (B, H, N, N), attn.shape
    assert bool(jnp.all(jnp.isfinite(out))) and bool(jnp.all(jnp.isfinite(attn)))
    # softmax rows must sum to 1
    row_sums = jnp.sum(attn, axis=-1)
    assert bool(jnp.all(jnp.abs(row_sums - 1.0) < 1e-3)), row_sums
    # match the pure-JAX / PyTorch-semantics reference
    assert bool(jnp.allclose(attn, attn_ref, atol=2e-3)), float(jnp.max(jnp.abs(attn - attn_ref)))
    assert bool(jnp.allclose(out, out_ref, atol=2e-3, rtol=2e-2)), float(jnp.max(jnp.abs(out - out_ref)))

    print("KERNEL_OK")
</pallas_src>

<mosaic_0001>
module attributes {stable_mosaic.version = 11 : i64} {
  func.func @_attention_kernel(%arg0: i32, %arg1: memref<1x16x128xf32, #tpu.memory_space<vmem>>, %arg2: memref<384x128xf32, #tpu.memory_space<vmem>>, %arg3: memref<128x128xf32, #tpu.memory_space<vmem>>, %arg4: memref<1x128xf32, #tpu.memory_space<vmem>>, %arg5: memref<1x16x128xf32, #tpu.memory_space<vmem>>, %arg6: memref<1x8x16x16xf32, #tpu.memory_space<vmem>>, %arg7: memref<16x128xf32, #tpu.memory_space<vmem>>) attributes {dimension_semantics = [#tpu.dimension_semantics<parallel>], iteration_bounds = array<i64: 2>, scalar_prefetch = 0 : i64, scratch_operands = 1 : i64, tpu.core_type = #tpu.core_type<tc>, window_params = [{transform_indices = @transform_0, window_bounds = array<i64: 1, 16, 128>}, {pipeline_mode = #tpu.pipeline_mode<synchronous>, transform_indices = @transform_1, window_bounds = array<i64: 384, 128>}, {pipeline_mode = #tpu.pipeline_mode<synchronous>, transform_indices = @transform_2, window_bounds = array<i64: 128, 128>}, {pipeline_mode = #tpu.pipeline_mode<synchronous>, transform_indices = @transform_3, window_bounds = array<i64: 1, 128>}, {transform_indices = @transform_4, window_bounds = array<i64: 1, 16, 128>}, {transform_indices = @transform_5, window_bounds = array<i64: 1, 8, 16, 16>}]} {
    %c0 = arith.constant 0 : index
    %c0_0 = arith.constant 0 : index
    %c0_1 = arith.constant 0 : index
    %0 = vector.load %arg1[%c0, %c0_0, %c0_1] : memref<1x16x128xf32, #tpu.memory_space<vmem>>, vector<1x16x128xf32>
    %1 = vector.shape_cast %0 : vector<1x16x128xf32> to vector<16x128xf32>
    %c0_2 = arith.constant 0 : index
    %c0_3 = arith.constant 0 : index
    %2 = vector.load %arg2[%c0_2, %c0_3] : memref<384x128xf32, #tpu.memory_space<vmem>>, vector<384x128xf32>
    %c0_4 = arith.constant 0 : index
    %c0_5 = arith.constant 0 : index
    %3 = vector.load %arg3[%c0_4, %c0_5] : memref<128x128xf32, #tpu.memory_space<vmem>>, vector<128x128xf32>
    %cst = arith.constant dense<0.000000e+00> : vector<16x384xf32>
    %4 = tpu.matmul %1, %2, %cst {dimension_numbers = #tpu.dot_dimension_numbers<[1], [1], [0], [0], [0, 0, 1, 0], [], []>} : vector<16x128xf32>, vector<384x128xf32>, vector<16x384xf32> -> vector<16x384xf32>
    %5 = vector.extract_strided_slice %4 {offsets = [0, 0], sizes = [16, 16], strides = [1, 1]} : vector<16x384xf32> to vector<16x16xf32>
    %6 = vector.extract_strided_slice %4 {offsets = [0, 128], sizes = [16, 16], strides = [1, 1]} : vector<16x384xf32> to vector<16x16xf32>
    %7 = vector.extract_strided_slice %4 {offsets = [0, 256], sizes = [16, 16], strides = [1, 1]} : vector<16x384xf32> to vector<16x16xf32>
    %cst_6 = arith.constant dense<0.000000e+00> : vector<16x16xf32>
    %8 = tpu.matmul %5, %6, %cst_6 {dimension_numbers = #tpu.dot_dimension_numbers<[1], [1], [0], [0], [0, 0, 1, 0], [], []>} : vector<16x16xf32>, vector<16x16xf32>, vector<16x16xf32> -> vector<16x16xf32>
    %cst_7 = arith.constant 2.500000e-01 : f32
    %9 = vector.broadcast %cst_7 : f32 to vector<16x16xf32>
    %10 = arith.mulf %8, %9 : vector<16x16xf32>
    %cst_8 = arith.constant dense<0xFF800000> : vector<16xf32>
    %11 = vector.multi_reduction <maximumf>, %10, %cst_8 [1] : vector<16x16xf32> to vector<16xf32>
    %12 = vector.shape_cast %11 : vector<16xf32> to vector<16x1xf32>
    %13 = vector.broadcast %12 : vector<16x1xf32> to vector<16x16xf32>
    %14 = arith.subf %10, %13 : vector<16x16xf32>
    %15 = math.exp %14 : vector<16x16xf32>
    %cst_9 = arith.constant dense<0.000000e+00> : vector<16xf32>
    %16 = vector.multi_reduction <add>, %15, %cst_9 [1] : vector<16x16xf32> to vector<16xf32>
    %17 = vector.shape_cast %16 : vector<16xf32> to vector<16x1xf32>
    %18 = vector.broadcast %17 : vector<16x1xf32> to vector<16x16xf32>
    %19 = arith.divf %15, %18 : vector<16x16xf32>
    %c0_10 = arith.constant 0 : index
    %c0_11 = arith.constant 0 : index
    %c0_12 = arith.constant 0 : index
    %c0_13 = arith.constant 0 : index
    %20 = vector.load %arg6[%c0_10, %c0_11, %c0_12, %c0_13] : memref<1x8x16x16xf32, #tpu.memory_space<vmem>>, vector<1x1x16x16xf32>
    %21 = vector.shape_cast %20 : vector<1x1x16x16xf32> to vector<16x16xf32>
    %22 = vector.shape_cast %19 : vector<16x16xf32> to vector<1x1x16x16xf32>
    tpu.vector_store %arg6[%c0_10, %c0_11, %c0_12, %c0_13], %22 {strides = array<i32>} : memref<1x8x16x16xf32, #tpu.memory_space<vmem>>, vector<1x1x16x16xf32>,
    %cst_14 = arith.constant dense<0.000000e+00> : vector<16x16xf32>
    %23 = tpu.matmul %19, %7, %cst_14 {dimension_numbers = #tpu.dot_dimension_numbers<[1], [0], [0], [1], [0, 0, 1, 1], [], []>} : vector<16x16xf32>, vector<16x16xf32>, vector<16x16xf32> -> vector<16x16xf32>
    %c0_15 = arith.constant 0 : index
    %c0_16 = arith.constant 0 : index
    %24 = vector.load %arg7[%c0_15, %c0_16] : memref<16x128xf32, #tpu.memory_space<vmem>>, vector<16x16xf32>
    tpu.vector_store %arg7[%c0_15, %c0_16], %23 {strides = array<i32>} : memref<16x128xf32, #tpu.memory_space<vmem>>, vector<16x16xf32>,
    %25 = vector.extract_strided_slice %4 {offsets = [0, 16], sizes = [16, 16], strides = [1, 1]} : vector<16x384xf32> to vector<16x16xf32>
    %26 = vector.extract_strided_slice %4 {offsets = [0, 144], sizes = [16, 16], strides = [1, 1]} : vector<16x384xf32> to vector<16x16xf32>
    %27 = vector.extract_strided_slice %4 {offsets = [0, 272], sizes = [16, 16], strides = [1, 1]} : vector<16x384xf32> to vector<16x16xf32>
    %cst_17 = arith.constant dense<0.000000e+00> : vector<16x16xf32>
    %28 = tpu.matmul %25, %26, %cst_17 {dimension_numbers = #tpu.dot_dimension_numbers<[1], [1], [0], [0], [0, 0, 1, 0], [], []>} : vector<16x16xf32>, vector<16x16xf32>, vector<16x16xf32> -> vector<16x16xf32>
    %cst_18 = arith.constant 2.500000e-01 : f32
    %29 = vector.broadcast %cst_18 : f32 to vector<16x16xf32>
    %30 = arith.mulf %28, %29 : vector<16x16xf32>
    %cst_19 = arith.constant dense<0xFF800000> : vector<16xf32>
    %31 = vector.multi_reduction <maximumf>, %30, %cst_19 [1] : vector<16x16xf32> to vector<16xf32>
    %32 = vector.shape_cast %31 : vector<16xf32> to vector<16x1xf32>
    %33 = vector.broadcast %32 : vector<16x1xf32> to vector<16x16xf32>
    %34 = arith.subf %30, %33 : vector<16x16xf32>
    %35 = math.exp %34 : vector<16x16xf32>
    %cst_20 = arith.constant dense<0.000000e+00> : vector<16xf32>
    %36 = vector.multi_reduction <add>, %35, %cst_20 [1] : vector<16x16xf32> to vector<16xf32>
    %37 = vector.shape_cast %36 : vector<16xf32> to vector<16x1xf32>
    %38 = vector.broadcast %37 : vector<16x1xf32> to vector<16x16xf32>
    %39 = arith.divf %35, %38 : vector<16x16xf32>
    %c0_21 = arith.constant 0 : index
    %c1 = arith.constant 1 : index
    %c0_22 = arith.constant 0 : index
    %c0_23 = arith.constant 0 : index
    %40 = vector.load %arg6[%c0_21, %c1, %c0_22, %c0_23] : memref<1x8x16x16xf32, #tpu.memory_space<vmem>>, vector<1x1x16x16xf32>
    %41 = vector.shape_cast %40 : vector<1x1x16x16xf32> to vector<16x16xf32>
    %42 = vector.shape_cast %39 : vector<16x16xf32> to vector<1x1x16x16xf32>
    tpu.vector_store %arg6[%c0_21, %c1, %c0_22, %c0_23], %42 {strides = array<i32>} : memref<1x8x16x16xf32, #tpu.memory_space<vmem>>, vector<1x1x16x16xf32>,
    %cst_24 = arith.constant dense<0.000000e+00> : vector<16x16xf32>
    %43 = tpu.matmul %39, %27, %cst_24 {dimension_numbers = #tpu.dot_dimension_numbers<[1], [0], [0], [1], [0, 0, 1, 1], [], []>} : vector<16x16xf32>, vector<16x16xf32>, vector<16x16xf32> -> vector<16x16xf32>
    %c0_25 = arith.constant 0 : index
    %c16 = arith.constant 16 : index
    %44 = vector.load %arg7[%c0_25, %c16] : memref<16x128xf32, #tpu.memory_space<vmem>>, vector<16x16xf32>
    tpu.vector_store %arg7[%c0_25, %c16], %43 {strides = array<i32>} : memref<16x128xf32, #tpu.memory_space<vmem>>, vector<16x16xf32>,
    %45 = vector.extract_strided_slice %4 {offsets = [0, 32], sizes = [16, 16], strides = [1, 1]} : vector<16x384xf32> to vector<16x16xf32>
    %46 = vector.extract_strided_slice %4 {offsets = [0, 160], sizes = [16, 16], strides = [1, 1]} : vector<16x384xf32> to vector<16x16xf32>
    %47 = vector.extract_strided_slice %4 {offsets = [0, 288], sizes = [16, 16], strides = [1, 1]} : vector<16x384xf32> to vector<16x16xf32>
    %cst_26 = arith.constant dense<0.000000e+00> : vector<16x16xf32>
    %48 = tpu.matmul %45, %46, %cst_26 {dimension_numbers = #tpu.dot_dimension_numbers<[1], [1], [0], [0], [0, 0, 1, 0], [], []>} : vector<16x16xf32>, vector<16x16xf32>, vector<16x16xf32> -> vector<16x16xf32>
    %cst_27 = arith.constant 2.500000e-01 : f32
    %49 = vector.broadcast %cst_27 : f32 to vector<16x16xf32>
    %50 = arith.mulf %48, %49 : vector<16x16xf32>
    %cst_28 = arith.constant dense<0xFF800000> : vector<16xf32>
    %51 = vector.multi_reduction <maximumf>, %50, %cst_28 [1] : vector<16x16xf32> to vector<16xf32>
    %52 = vector.shape_cast %51 : vector<16xf32> to vector<16x1xf32>
    %53 = vector.broadcast %52 : vector<16x1xf32> to vector<16x16xf32>
    %54 = arith.subf %50, %53 : vector<16x16xf32>
    %55 = math.exp %54 : vector<16x16xf32>
    %cst_29 = arith.constant dense<0.000000e+00> : vector<16xf32>
    %56 = vector.multi_reduction <add>, %55, %cst_29 [1] : vector<16x16xf32> to vector<16xf32>
    %57 = vector.shape_cast %56 : vector<16xf32> to vector<16x1xf32>
    %58 = vector.broadcast %57 : vector<16x1xf32> to vector<16x16xf32>
    %59 = arith.divf %55, %58 : vector<16x16xf32>
    %c0_30 = arith.constant 0 : index
    %c2 = arith.constant 2 : index
    %c0_31 = arith.constant 0 : index
    %c0_32 = arith.constant 0 : index
    %60 = vector.load %arg6[%c0_30, %c2, %c0_31, %c0_32] : memref<1x8x16x16xf32, #tpu.memory_space<vmem>>, vector<1x1x16x16xf32>
    %61 = vector.shape_cast %60 : vector<1x1x16x16xf32> to vector<16x16xf32>
    %62 = vector.shape_cast %59 : vector<16x16xf32> to vector<1x1x16x16xf32>
    tpu.vector_store %arg6[%c0_30, %c2, %c0_31, %c0_32], %62 {strides = array<i32>} : memref<1x8x16x16xf32, #tpu.memory_space<vmem>>, vector<1x1x16x16xf32>,
    %cst_33 = arith.constant dense<0.000000e+00> : vector<16x16xf32>
    %63 = tpu.matmul %59, %47, %cst_33 {dimension_numbers = #tpu.dot_dimension_numbers<[1], [0], [0], [1], [0, 0, 1, 1], [], []>} : vector<16x16xf32>, vector<16x16xf32>, vector<16x16xf32> -> vector<16x16xf32>
    %c0_34 = arith.constant 0 : index
    %c32 = arith.constant 32 : index
    %64 = vector.load %arg7[%c0_34, %c32] : memref<16x128xf32, #tpu.memory_space<vmem>>, vector<16x16xf32>
    tpu.vector_store %arg7[%c0_34, %c32], %63 {strides = array<i32>} : memref<16x128xf32, #tpu.memory_space<vmem>>, vector<16x16xf32>,
    %65 = vector.extract_strided_slice %4 {offsets = [0, 48], sizes = [16, 16], strides = [1, 1]} : vector<16x384xf32> to vector<16x16xf32>
    %66 = vector.extract_strided_slice %4 {offsets = [0, 176], sizes = [16, 16], strides = [1, 1]} : vector<16x384xf32> to vector<16x16xf32>
    %67 = vector.extract_strided_slice %4 {offsets = [0, 304], sizes = [16, 16], strides = [1, 1]} : vector<16x384xf32> to vector<16x16xf32>
    %cst_35 = arith.constant dense<0.000000e+00> : vector<16x16xf32>
    %68 = tpu.matmul %65, %66, %cst_35 {dimension_numbers = #tpu.dot_dimension_numbers<[1], [1], [0], [0], [0, 0, 1, 0], [], []>} : vector<16x16xf32>, vector<16x16xf32>, vector<16x16xf32> -> vector<16x16xf32>
    %cst_36 = arith.constant 2.500000e-01 : f32
    %69 = vector.broadcast %cst_36 : f32 to vector<16x16xf32>
    %70 = arith.mulf %68, %69 : vector<16x16xf32>
    %cst_37 = arith.constant dense<0xFF800000> : vector<16xf32>
    %71 = vector.multi_reduction <maximumf>, %70, %cst_37 [1] : vector<16x16xf32> to vector<16xf32>
    %72 = vector.shape_cast %71 : vector<16xf32> to vector<16x1xf32>
    %73 = vector.broadcast %72 : vector<16x1xf32> to vector<16x16xf32>
    %74 = arith.subf %70, %73 : vector<16x16xf32>
    %75 = math.exp %74 : vector<16x16xf32>
    %cst_38 = arith.constant dense<0.000000e+00> : vector<16xf32>
    %76 = vector.multi_reduction <add>, %75, %cst_38 [1] : vector<16x16xf32> to vector<16xf32>
    %77 = vector.shape_cast %76 : vector<16xf32> to vector<16x1xf32>
    %78 = vector.broadcast %77 : vector<16x1xf32> to vector<16x16xf32>
    %79 = arith.divf %75, %78 : vector<16x16xf32>
    %c0_39 = arith.constant 0 : index
    %c3 = arith.constant 3 : index
    %c0_40 = arith.constant 0 : index
    %c0_41 = arith.constant 0 : index
    %80 = vector.load %arg6[%c0_39, %c3, %c0_40, %c0_41] : memref<1x8x16x16xf32, #tpu.memory_space<vmem>>, vector<1x1x16x16xf32>
    %81 = vector.shape_cast %80 : vector<1x1x16x16xf32> to vector<16x16xf32>
    %82 = vector.shape_cast %79 : vector<16x16xf32> to vector<1x1x16x16xf32>
    tpu.vector_store %arg6[%c0_39, %c3, %c0_40, %c0_41], %82 {strides = array<i32>} : memref<1x8x16x16xf32, #tpu.memory_space<vmem>>, vector<1x1x16x16xf32>,
    %cst_42 = arith.constant dense<0.000000e+00> : vector<16x16xf32>
    %83 = tpu.matmul %79, %67, %cst_42 {dimension_numbers = #tpu.dot_dimension_numbers<[1], [0], [0], [1], [0, 0, 1, 1], [], []>} : vector<16x16xf32>, vector<16x16xf32>, vector<16x16xf32> -> vector<16x16xf32>
    %c0_43 = arith.constant 0 : index
    %c48 = arith.constant 48 : index
    %84 = vector.load %arg7[%c0_43, %c48] : memref<16x128xf32, #tpu.memory_space<vmem>>, vector<16x16xf32>
    tpu.vector_store %arg7[%c0_43, %c48], %83 {strides = array<i32>} : memref<16x128xf32, #tpu.memory_space<vmem>>, vector<16x16xf32>,
    %85 = vector.extract_strided_slice %4 {offsets = [0, 64], sizes = [16, 16], strides = [1, 1]} : vector<16x384xf32> to vector<16x16xf32>
    %86 = vector.extract_strided_slice %4 {offsets = [0, 192], sizes = [16, 16], strides = [1, 1]} : vector<16x384xf32> to vector<16x16xf32>
    %87 = vector.extract_strided_slice %4 {offsets = [0, 320], sizes = [16, 16], strides = [1, 1]} : vector<16x384xf32> to vector<16x16xf32>
    %cst_44 = arith.constant dense<0.000000e+00> : vector<16x16xf32>
    %88 = tpu.matmul %85, %86, %cst_44 {dimension_numbers = #tpu.dot_dimension_numbers<[1], [1], [0], [0], [0, 0, 1, 0], [], []>} : vector<16x16xf32>, vector<16x16xf32>, vector<16x16xf32> -> vector<16x16xf32>
    %cst_45 = arith.constant 2.500000e-01 : f32
    %89 = vector.broadcast %cst_45 : f32 to vector<16x16xf32>
    %90 = arith.mulf %88, %89 : vector<16x16xf32>
    %cst_46 = arith.constant dense<0xFF800000> : vector<16xf32>
    %91 = vector.multi_reduction <maximumf>, %90, %cst_46 [1] : vector<16x16xf32> to vector<16xf32>
    %92 = vector.shape_cast %91 : vector<16xf32> to vector<16x1xf32>
    %93 = vector.broadcast %92 : vector<16x1xf32> to vector<16x16xf32>
    %94 = arith.subf %90, %93 : vector<16x16xf32>
    %95 = math.exp %94 : vector<16x16xf32>
    %cst_47 = arith.constant dense<0.000000e+00> : vector<16xf32>
    %96 = vector.multi_reduction <add>, %95, %cst_47 [1] : vector<16x16xf32> to vector<16xf32>
    %97 = vector.shape_cast %96 : vector<16xf32> to vector<16x1xf32>
    %98 = vector.broadcast %97 : vector<16x1xf32> to vector<16x16xf32>
    %99 = arith.divf %95, %98 : vector<16x16xf32>
    %c0_48 = arith.constant 0 : index
    %c4 = arith.constant 4 : index
    %c0_49 = arith.constant 0 : index
    %c0_50 = arith.constant 0 : index
    %100 = vector.load %arg6[%c0_48, %c4, %c0_49, %c0_50] : memref<1x8x16x16xf32, #tpu.memory_space<vmem>>, vector<1x1x16x16xf32>
    %101 = vector.shape_cast %100 : vector<1x1x16x16xf32> to vector<16x16xf32>
    %102 = vector.shape_cast %99 : vector<16x16xf32> to vector<1x1x16x16xf32>
    tpu.vector_store %arg6[%c0_48, %c4, %c0_49, %c0_50], %102 {strides = array<i32>} : memref<1x8x16x16xf32, #tpu.memory_space<vmem>>, vector<1x1x16x16xf32>,
    %cst_51 = arith.constant dense<0.000000e+00> : vector<16x16xf32>
    %103 = tpu.matmul %99, %87, %cst_51 {dimension_numbers = #tpu.dot_dimension_numbers<[1], [0], [0], [1], [0, 0, 1, 1], [], []>} : vector<16x16xf32>, vector<16x16xf32>, vector<16x16xf32> -> vector<16x16xf32>
    %c0_52 = arith.constant 0 : index
    %c64 = arith.constant 64 : index
    %104 = vector.load %arg7[%c0_52, %c64] : memref<16x128xf32, #tpu.memory_space<vmem>>, vector<16x16xf32>
    tpu.vector_store %arg7[%c0_52, %c64], %103 {strides = array<i32>} : memref<16x128xf32, #tpu.memory_space<vmem>>, vector<16x16xf32>,
    %105 = vector.extract_strided_slice %4 {offsets = [0, 80], sizes = [16, 16], strides = [1, 1]} : vector<16x384xf32> to vector<16x16xf32>
    %106 = vector.extract_strided_slice %4 {offsets = [0, 208], sizes = [16, 16], strides = [1, 1]} : vector<16x384xf32> to vector<16x16xf32>
    %107 = vector.extract_strided_slice %4 {offsets = [0, 336], sizes = [16, 16], strides = [1, 1]} : vector<16x384xf32> to vector<16x16xf32>
    %cst_53 = arith.constant dense<0.000000e+00> : vector<16x16xf32>
    %108 = tpu.matmul %105, %106, %cst_53 {dimension_numbers = #tpu.dot_dimension_numbers<[1], [1], [0], [0], [0, 0, 1, 0], [], []>} : vector<16x16xf32>, vector<16x16xf32>, vector<16x16xf32> -> vector<16x16xf32>
    %cst_54 = arith.constant 2.500000e-01 : f32
    %109 = vector.broadcast %cst_54 : f32 to vector<16x16xf32>
    %110 = arith.mulf %108, %109 : vector<16x16xf32>
    %cst_55 = arith.constant dense<0xFF800000> : vector<16xf32>
    %111 = vector.multi_reduction <maximumf>, %110, %cst_55 [1] : vector<16x16xf32> to vector<16xf32>
    %112 = vector.shape_cast %111 : vector<16xf32> to vector<16x1xf32>
    %113 = vector.broadcast %112 : vector<16x1xf32> to vector<16x16xf32>
    %114 = arith.subf %110, %113 : vector<16x16xf32>
    %115 = math.exp %114 : vector<16x16xf32>
    %cst_56 = arith.constant dense<0.000000e+00> : vector<16xf32>
    %116 = vector.multi_reduction <add>, %115, %cst_56 [1] : vector<16x16xf32> to vector<16xf32>
    %117 = vector.shape_cast %116 : vector<16xf32> to vector<16x1xf32>
    %118 = vector.broadcast %117 : vector<16x1xf32> to vector<16x16xf32>
    %119 = arith.divf %115, %118 : vector<16x16xf32>
    %c0_57 = arith.constant 0 : index
    %c5 = arith.constant 5 : index
    %c0_58 = arith.constant 0 : index
    %c0_59 = arith.constant 0 : index
    %120 = vector.load %arg6[%c0_57, %c5, %c0_58, %c0_59] : memref<1x8x16x16xf32, #tpu.memory_space<vmem>>, vector<1x1x16x16xf32>
    %121 = vector.shape_cast %120 : vector<1x1x16x16xf32> to vector<16x16xf32>
    %122 = vector.shape_cast %119 : vector<16x16xf32> to vector<1x1x16x16xf32>
    tpu.vector_store %arg6[%c0_57, %c5, %c0_58, %c0_59], %122 {strides = array<i32>} : memref<1x8x16x16xf32, #tpu.memory_space<vmem>>, vector<1x1x16x16xf32>,
    %cst_60 = arith.constant dense<0.000000e+00> : vector<16x16xf32>
    %123 = tpu.matmul %119, %107, %cst_60 {dimension_numbers = #tpu.dot_dimension_numbers<[1], [0], [0], [1], [0, 0, 1, 1], [], []>} : vector<16x16xf32>, vector<16x16xf32>, vector<16x16xf32> -> vector<16x16xf32>
    %c0_61 = arith.constant 0 : index
    %c80 = arith.constant 80 : index
    %124 = vector.load %arg7[%c0_61, %c80] : memref<16x128xf32, #tpu.memory_space<vmem>>, vector<16x16xf32>
    tpu.vector_store %arg7[%c0_61, %c80], %123 {strides = array<i32>} : memref<16x128xf32, #tpu.memory_space<vmem>>, vector<16x16xf32>,
    %125 = vector.extract_strided_slice %4 {offsets = [0, 96], sizes = [16, 16], strides = [1, 1]} : vector<16x384xf32> to vector<16x16xf32>
    %126 = vector.extract_strided_slice %4 {offsets = [0, 224], sizes = [16, 16], strides = [1, 1]} : vector<16x384xf32> to vector<16x16xf32>
    %127 = vector.extract_strided_slice %4 {offsets = [0, 352], sizes = [16, 16], strides = [1, 1]} : vector<16x384xf32> to vector<16x16xf32>
    %cst_62 = arith.constant dense<0.000000e+00> : vector<16x16xf32>
    %128 = tpu.matmul %125, %126, %cst_62 {dimension_numbers = #tpu.dot_dimension_numbers<[1], [1], [0], [0], [0, 0, 1, 0], [], []>} : vector<16x16xf32>, vector<16x16xf32>, vector<16x16xf32> -> vector<16x16xf32>
    %cst_63 = arith.constant 2.500000e-01 : f32
    %129 = vector.broadcast %cst_63 : f32 to vector<16x16xf32>
    %130 = arith.mulf %128, %129 : vector<16x16xf32>
    %cst_64 = arith.constant dense<0xFF800000> : vector<16xf32>
    %131 = vector.multi_reduction <maximumf>, %130, %cst_64 [1] : vector<16x16xf32> to vector<16xf32>
    %132 = vector.shape_cast %131 : vector<16xf32> to vector<16x1xf32>
    %133 = vector.broadcast %132 : vector<16x1xf32> to vector<16x16xf32>
    %134 = arith.subf %130, %133 : vector<16x16xf32>
    %135 = math.exp %134 : vector<16x16xf32>
    %cst_65 = arith.constant dense<0.000000e+00> : vector<16xf32>
    %136 = vector.multi_reduction <add>, %135, %cst_65 [1] : vector<16x16xf32> to vector<16xf32>
    %137 = vector.shape_cast %136 : vector<16xf32> to vector<16x1xf32>
    %138 = vector.broadcast %137 : vector<16x1xf32> to vector<16x16xf32>
    %139 = arith.divf %135, %138 : vector<16x16xf32>
    %c0_66 = arith.constant 0 : index
    %c6 = arith.constant 6 : index
    %c0_67 = arith.constant 0 : index
    %c0_68 = arith.constant 0 : index
    %140 = vector.load %arg6[%c0_66, %c6, %c0_67, %c0_68] : memref<1x8x16x16xf32, #tpu.memory_space<vmem>>, vector<1x1x16x16xf32>
    %141 = vector.shape_cast %140 : vector<1x1x16x16xf32> to vector<16x16xf32>
    %142 = vector.shape_cast %139 : vector<16x16xf32> to vector<1x1x16x16xf32>
    tpu.vector_store %arg6[%c0_66, %c6, %c0_67, %c0_68], %142 {strides = array<i32>} : memref<1x8x16x16xf32, #tpu.memory_space<vmem>>, vector<1x1x16x16xf32>,
    %cst_69 = arith.constant dense<0.000000e+00> : vector<16x16xf32>
    %143 = tpu.matmul %139, %127, %cst_69 {dimension_numbers = #tpu.dot_dimension_numbers<[1], [0], [0], [1], [0, 0, 1, 1], [], []>} : vector<16x16xf32>, vector<16x16xf32>, vector<16x16xf32> -> vector<16x16xf32>
    %c0_70 = arith.constant 0 : index
    %c96 = arith.constant 96 : index
    %144 = vector.load %arg7[%c0_70, %c96] : memref<16x128xf32, #tpu.memory_space<vmem>>, vector<16x16xf32>
    tpu.vector_store %arg7[%c0_70, %c96], %143 {strides = array<i32>} : memref<16x128xf32, #tpu.memory_space<vmem>>, vector<16x16xf32>,
    %145 = vector.extract_strided_slice %4 {offsets = [0, 112], sizes = [16, 16], strides = [1, 1]} : vector<16x384xf32> to vector<16x16xf32>
    %146 = vector.extract_strided_slice %4 {offsets = [0, 240], sizes = [16, 16], strides = [1, 1]} : vector<16x384xf32> to vector<16x16xf32>
    %147 = vector.extract_strided_slice %4 {offsets = [0, 368], sizes = [16, 16], strides = [1, 1]} : vector<16x384xf32> to vector<16x16xf32>
    %cst_71 = arith.constant dense<0.000000e+00> : vector<16x16xf32>
    %148 = tpu.matmul %145, %146, %cst_71 {dimension_numbers = #tpu.dot_dimension_numbers<[1], [1], [0], [0], [0, 0, 1, 0], [], []>} : vector<16x16xf32>, vector<16x16xf32>, vector<16x16xf32> -> vector<16x16xf32>
    %cst_72 = arith.constant 2.500000e-01 : f32
    %149 = vector.broadcast %cst_72 : f32 to vector<16x16xf32>
    %150 = arith.mulf %148, %149 : vector<16x16xf32>
    %cst_73 = arith.constant dense<0xFF800000> : vector<16xf32>
    %151 = vector.multi_reduction <maximumf>, %150, %cst_73 [1] : vector<16x16xf32> to vector<16xf32>
    %152 = vector.shape_cast %151 : vector<16xf32> to vector<16x1xf32>
    %153 = vector.broadcast %152 : vector<16x1xf32> to vector<16x16xf32>
    %154 = arith.subf %150, %153 : vector<16x16xf32>
    %155 = math.exp %154 : vector<16x16xf32>
    %cst_74 = arith.constant dense<0.000000e+00> : vector<16xf32>
    %156 = vector.multi_reduction <add>, %155, %cst_74 [1] : vector<16x16xf32> to vector<16xf32>
    %157 = vector.shape_cast %156 : vector<16xf32> to vector<16x1xf32>
    %158 = vector.broadcast %157 : vector<16x1xf32> to vector<16x16xf32>
    %159 = arith.divf %155, %158 : vector<16x16xf32>
    %c0_75 = arith.constant 0 : index
    %c7 = arith.constant 7 : index
    %c0_76 = arith.constant 0 : index
    %c0_77 = arith.constant 0 : index
    %160 = vector.load %arg6[%c0_75, %c7, %c0_76, %c0_77] : memref<1x8x16x16xf32, #tpu.memory_space<vmem>>, vector<1x1x16x16xf32>
    %161 = vector.shape_cast %160 : vector<1x1x16x16xf32> to vector<16x16xf32>
    %162 = vector.shape_cast %159 : vector<16x16xf32> to vector<1x1x16x16xf32>
    tpu.vector_store %arg6[%c0_75, %c7, %c0_76, %c0_77], %162 {strides = array<i32>} : memref<1x8x16x16xf32, #tpu.memory_space<vmem>>, vector<1x1x16x16xf32>,
    %cst_78 = arith.constant dense<0.000000e+00> : vector<16x16xf32>
    %163 = tpu.matmul %159, %147, %cst_78 {dimension_numbers = #tpu.dot_dimension_numbers<[1], [0], [0], [1], [0, 0, 1, 1], [], []>} : vector<16x16xf32>, vector<16x16xf32>, vector<16x16xf32> -> vector<16x16xf32>
    %c0_79 = arith.constant 0 : index
    %c112 = arith.constant 112 : index
    %164 = vector.load %arg7[%c0_79, %c112] : memref<16x128xf32, #tpu.memory_space<vmem>>, vector<16x16xf32>
    tpu.vector_store %arg7[%c0_79, %c112], %163 {strides = array<i32>} : memref<16x128xf32, #tpu.memory_space<vmem>>, vector<16x16xf32>,
    %c0_80 = arith.constant 0 : index
    %c0_81 = arith.constant 0 : index
    %165 = vector.load %arg7[%c0_80, %c0_81] : memref<16x128xf32, #tpu.memory_space<vmem>>, vector<16x128xf32>
    %cst_82 = arith.constant dense<0.000000e+00> : vector<16x128xf32>
    %166 = tpu.matmul %165, %3, %cst_82 {dimension_numbers = #tpu.dot_dimension_numbers<[1], [1], [0], [0], [0, 0, 1, 0], [], []>} : vector<16x128xf32>, vector<128x128xf32>, vector<16x128xf32> -> vector<16x128xf32>
    %c0_83 = arith.constant 0 : index
    %c0_84 = arith.constant 0 : index
    %167 = vector.load %arg4[%c0_83, %c0_84] : memref<1x128xf32, #tpu.memory_space<vmem>>, vector<1x128xf32>
    %168 = vector.broadcast %167 : vector<1x128xf32> to vector<16x128xf32>
    %169 = arith.addf %166, %168 : vector<16x128xf32>
    %c0_85 = arith.constant 0 : index
    %c0_86 = arith.constant 0 : index
    %c0_87 = arith.constant 0 : index
    %170 = vector.load %arg5[%c0_85, %c0_86, %c0_87] : memref<1x16x128xf32, #tpu.memory_space<vmem>>, vector<1x16x128xf32>
    %171 = vector.shape_cast %170 : vector<1x16x128xf32> to vector<16x128xf32>
    %172 = vector.shape_cast %169 : vector<16x128xf32> to vector<1x16x128xf32>
    tpu.vector_store %arg5[%c0_85, %c0_86, %c0_87], %172 {strides = array<i32>} : memref<1x16x128xf32, #tpu.memory_space<vmem>>, vector<1x16x128xf32>,
    return
  }
  func.func @transform_0(%arg0: i32) -> (i32, i32, i32) {
    %c0_i32 = arith.constant 0 : i32
    %c0_i32_0 = arith.constant 0 : i32
    %c0_i32_1 = arith.constant 0 : i32
    return %arg0, %c0_i32, %c0_i32_0 : i32, i32, i32
  }
  func.func @transform_1(%arg0: i32) -> (i32, i32) {
    %c0_i32 = arith.constant 0 : i32
    %c0_i32_0 = arith.constant 0 : i32
    %c0_i32_1 = arith.constant 0 : i32
    return %c0_i32, %c0_i32_0 : i32, i32
  }
  func.func @transform_2(%arg0: i32) -> (i32, i32) {
    %c0_i32 = arith.constant 0 : i32
    %c0_i32_0 = arith.constant 0 : i32
    %c0_i32_1 = arith.constant 0 : i32
    return %c0_i32, %c0_i32_0 : i32, i32
  }
  func.func @transform_3(%arg0: i32) -> (i32, i32) {
    %c0_i32 = arith.constant 0 : i32
    %c0_i32_0 = arith.constant 0 : i32
    %c0_i32_1 = arith.constant 0 : i32
    return %c0_i32, %c0_i32_0 : i32, i32
  }
  func.func @transform_4(%arg0: i32) -> (i32, i32, i32) {
    %c0_i32 = arith.constant 0 : i32
    %c0_i32_0 = arith.constant 0 : i32
    %c0_i32_1 = arith.constant 0 : i32
    return %arg0, %c0_i32, %c0_i32_0 : i32, i32, i32
  }
  func.func @transform_5(%arg0: i32) -> (i32, i32, i32, i32) {
    %c0_i32 = arith.constant 0 : i32
    %c0_i32_0 = arith.constant 0 : i32
    %c0_i32_1 = arith.constant 0 : i32
    %c0_i32_2 = arith.constant 0 : i32
    return %arg0, %c0_i32, %c0_i32_0, %c0_i32_1 : i32, i32, i32, i32
  }
}

</mosaic_0001>

<bundles_post_ra>
// kernel: attention_forward.1
= control target key start
LH: loop header
LB: loop body
LE: loop exit
PB: predicated region body
PF: predicated region fallthrough
CT: control target
= control target key end

     0   :  { %11 = vsyncpa [#allocation4], 0  ;;  %s3788_s0 = inlined_call_operand.hbm [shape: f32[2,16,128], index: 0, kind: input, shape index: {}]   ;;  %s3789_s1 = inlined_call_operand.hbm [shape: f32[384,128], index: 1, kind: input, shape index: {}]   ;;  %s3790_s2 = inlined_call_operand.hbm [shape: f32[128,128], index: 2, kind: input, shape index: {}]   ;;  %s3791_s3 = inlined_call_operand.vmem [shape: f32[1,128], index: 3, kind: input, shape index: {}]   ;;  %s3792_s4 = inlined_call_operand.hbm [shape: f32[2,16,128], index: 4, kind: output, shape index: {0}]   ;;  %s3793_s5 = inlined_call_operand.hbm [shape: f32[2,8,16,16], index: 5, kind: output, shape index: {1}]  }
   0x1   :  { %13 = vsyncpa [#allocation4 + $0x1], 0 }
   0x2   :  { %14 = vsyncpa [#allocation7], 0 }
   0x3   :  { %15 = vsyncpa [#allocation5], 0 }
   0x4   :  { %17 = vsyncpa [#allocation5 + $0x1], 0 }
   0x5   :  { %18 = vsyncpa [#allocation11], 0 }
   0x6   :  { %20 = vsyncpa [#allocation11 + $0x1], 0  ;;  %s3236_s18 = smov 0   ;;  %s3238_s19 = smov 0  }
   0x7   :  { %s3240_s20 = smov 0   ;;  %s3242_s21 = smov 0  }
   0x8 LB: > { %s3257_s22 = sadd.s32 4294967295, %s3188_s21   ;;  %s2457_s23 = sadd.s32 4294967294, %s3188_s21   ;;  %s3188_s21 = sphi %s3242_s21, %s3816_s21   ;;  %s3184_s20 = sphi %s3240_s20, %s3815_s20   ;;  %s3180_s19 = sphi %s3238_s19, %s3814_s19   ;;  %s3176_s18 = sphi %s3236_s18, %s3813_s18  }
   0x9   : > { %p46_p0 = scmp.ne.s32.totalorder %s3180_s19, %s3176_s18  ;;  %p3794_p1 = scmp.eq.s32.totalorder %s3257_s22, 0 }
   0xa   : > { %p133_p2 = scmp.eq.s32.totalorder %s3257_s22, 1  ;;  %p139_p3 = scmp.eq.s32.totalorder %s2457_s23, 1 }
   0xb   : > { %p3266_p4 = por %p3794_p1, %p46_p0  ;;  %p2458_p5 = scmp.ge.s32.totalorder %s3188_s21, 1 }
   0xc   : > { %p3271_p6 = por %p139_p3, %p46_p0  ;;  %p172_p7 = scmp.lt.s32.totalorder %s3188_s21, 3 }
   0xd   : > { %s3799_s24 = scalar_select %p3266_p4, 1, 0 }
   0xe   : > { %s3800_s25 = scalar_select %p3271_p6, 1, 0 }
   0xf   : > { %p3276_p8 = pnand %p2458_p5, %p172_p7  ;;  %s3190_s27 = smov [#allocation6]  }
  0x10   : > { %s184_s28 = sshll.u32 %s3190_s27, 4  ;;  %s3191_s30 = smov [#allocation8]   ;;  %s185_s28 = int_to_ptr.vmem [resolvable:$true] %s184_s28 }
  0x11   : > { %s3801_s26 = scalar_select %p3276_p8, 1, 0 }
  0x12   : > { %p2877_p9 = pneg %p3276_p8  ;;  %s197_s6 = sshll.u32 %s3191_s30, 4  ;;  %s198_s6 = int_to_ptr.vmem [resolvable:$true] %s197_s6 }
  0x13   : > { %s3021_s7 = scalar_lea.vmem %s185_s28, 6144  ;;  %p3029_p5 = scmp.lt.s32.totalorder %s185_s28, %s185_s28 }
  0x14   : > { %p3285_p11 = pnand %p2877_p9, %p3794_p1  ;;  %p3022_p13 = scmp.ne.s32.totalorder %s185_s28, %s3021_s7 }
  0x15   : > { %p3030_p7 = scmp.lt.s32.totalorder %s3021_s7, %s3021_s7 }
  0x16   : > { %p3012_p12 = pneg %p3285_p11 }
  0x17   : > { %p3031_p10 = por %p3030_p7, %p3029_p5 }
  0x18   : > { %p3024_p0 = pnand %p3022_p13, %p3012_p12 }
  0x1a   : > { %p3025_p3 = pneg %p3024_p0 }
  0x1c   : > { %p3032_p9 = pnand %p3031_p10, %p3025_p3 }
  0x1e   : > { %3035 = shalt.err (!%p3032_p9)
}
  0x1f   : > { %s3795_s8 = smov 128   ;;  %s3193_s9 = smov 8  }
  0x20   : > { %2880 = dma.hbm_to_vmem [thread:$0]  (!%p3285_p11), %s3789_s1, 6144, %s185_s28, [#allocation7], %s3795_s8, %s3795_s8, %s3193_s9  }
  0x21   : > { %s3047_s12 = scalar_lea.vmem %s198_s6, 2048  ;;  %p3055_p10 = scmp.lt.s32.totalorder %s198_s6, %s198_s6 }
  0x22   : > { %p3048_p13 = scmp.ne.s32.totalorder %s198_s6, %s3047_s12  ;;  %p3056_p3 = scmp.lt.s32.totalorder %s3047_s12, %s3047_s12 }
  0x24   : > { %p3050_p0 = pnand %p3048_p13, %p3012_p12  ;;  %p3057_p7 = por %p3056_p3, %p3055_p10 }
  0x26   : > { %p3051_p5 = pneg %p3050_p0 }
  0x28   : > { %p3058_p9 = pnand %p3057_p7, %p3051_p5 }
  0x2a   : > { %3061 = shalt.err (!%p3058_p9)
}
  0x2b   : > { %2883 = dma.hbm_to_vmem [thread:$0]  (!%p3285_p11), %s3790_s2, 2048, %s198_s6, [#allocation7], %s3795_s8, %s3795_s8, %s3193_s9  }
  0x2c   : > { %s3314_s15 = sadd.s32 1, %s3188_s21   ;;  %s33_s16 = sadd.s32 1, %s3184_s20 }
  0x2d   : > { %s30_s17 = ssub.s32 %s3188_s21, %s3314_s15  ;;  %p40_p12 = scmp.ne.s32.totalorder %s3184_s20, %s3180_s19 }
  0x2e   : > { %p31_p13 = scmp.eq.s32.totalorder %s30_s17, 0  ;;  %p41_p0 = scmp.eq.s32.totalorder %s3188_s21, 0 }
  0x2f   : > { %p3324_p5 = por %p133_p2, %p40_p12  ;;  %p2897_p10 = scmp.lt.s32.totalorder %s3188_s21, 2 }
  0x30   : > { %s3330_s27 = scalar_select %p31_p13, %s3184_s20, %s33_s16  }
  0x31   : > { %s3803_s23 = scalar_select %p3324_p5, 1, 0 }
  0x32   : > { %p42_p3 = por %p41_p0, %p40_p12  ;;  %s214_s28 = sand.u32 1, %s3184_s20  }
  0x33   : > { %s2462_s29 = sshll.u32 %s214_s28, 4  ;;  %s2542_s30 = sshll.u32 %s3188_s21, 8 }
  0x34   : > { %s3337_s10 = scalar_lea.hbm %s3788_s0, %s2542_s30  ;;  %s218_s11 = scalar_lea.vmem [#allocation3], %s2462_s29 }
  0x35   : > { %s225_s12 = sshll.u32 %s218_s11, 4  ;;  %p3341_p2 = pnand %p2897_p10, %p42_p3  ;;  %s3339_s12 = int_to_ptr.vmem [resolvable:$true] %s225_s12 }
  0x36   : > { %s3345_s14 = scalar_lea.sflag [#allocation4], %s214_s28  ;;  %s3062_s16 = scalar_lea.hbm %s3337_s10, 256 }
  0x37   : > { %p3063_p11 = scmp.ne.s32.totalorder %s3337_s10, %s3062_s16  ;;  %p3064_p7 = pneg %p3341_p2 }
  0x38   : > { %s3067_s29 = scalar_lea.hbm %s3788_s0, 512  ;;  %p3068_p13 = scmp.lt.s32.totalorder %s3337_s10, %s3788_s0 }
  0x39   : > { %p3065_p9 = pnand %p3064_p7, %p3063_p11  ;;  %p3069_p0 = scmp.lt.s32.totalorder %s3067_s29, %s3062_s16 }
  0x3b   : > { %p3066_p12 = pneg %p3065_p9  ;;  %p3070_p10 = por %p3069_p0, %p3068_p13 }
  0x3d   : > { %p3071_p3 = pnand %p3070_p10, %p3066_p12 }
  0x3f   : > { %3074 = shalt.err (!%p3071_p3)
}
  0x40   : > { %s3075_s28 = scalar_lea.vmem %s3339_s12, 256  ;;  %s3194_s11 = smov [#allocation3]  }
  0x41   : > { %p3076_p1 = scmp.ne.s32.totalorder %s3339_s12, %s3075_s28  ;;  %s3080_s8 = sshll.u32 %s3194_s11, 4  ;;  %s3081_s8 = int_to_ptr.vmem [resolvable:$false] %s3080_s8 }
  0x42   : > { %s3082_s17 = scalar_lea.vmem %s3081_s8, 512  ;;  %p3083_p9 = scmp.lt.s32.totalorder %s3339_s12, %s3081_s8 }
  0x43   : > { %p3078_p6 = pnand %p3076_p1, %p3064_p7  ;;  %p3084_p5 = scmp.lt.s32.totalorder %s3082_s17, %s3075_s28 }
  0x45   : > { %p3079_p11 = pneg %p3078_p6  ;;  %p3085_p4 = por %p3084_p5, %p3083_p9 }
  0x47   : > { %p3086_p8 = pnand %p3085_p4, %p3079_p11 }
  0x49   : > { %3089 = shalt.err (!%p3086_p8)
}
  0x4a   : > { %s3805_s16 = smov 128   ;;  %p3806_p1 = scmp.ne.s32.totalorder %s3801_s26, 0 }
  0x4b   : > { %2887 = dma.hbm_to_vmem [thread:$0]  (!%p3341_p2), %s3337_s10, 256, %s3339_s12, %s3345_s14, %s3805_s16, %s3805_s16, %s3193_s9  }
  0x4c   : > { %237 = sbr.rel (%p3806_p1) target bundleno = 3506 (0xdb2), region = 36  ;;  %s3372_s30 = sand.u32 (!%p3806_p1), 1, %s3180_s19  }
  0x4d   : > { %s2466_s8 = sshll.u32 (!%p3806_p1), %s3372_s30, 4  ;;  %s240_s29 = scalar_lea.sflag (!%p3806_p1), [#allocation4], %s3372_s30 }
  0x4e   : > { %s3378_s13 = scalar_lea.vmem (!%p3806_p1), [#allocation3], %s2466_s8  ;;  %p3807_p4 = scmp.ne.s32.totalorder (!%p3806_p1), %s3799_s24, 0 }
  0x51   : > { %3159 = dma.done.wait (%p3807_p4), %s240_s29, 256  }
  0x52   : > { %3161 = vsyncadd (%p3807_p4), %s240_s29, 4294967040  ;;  %p3808_p6 = scmp.eq.s32.totalorder %s3257_s22, 0 }
  0x54   : > { %3163 = dma.done.wait (%p3808_p6), [#allocation7], 8192   ;;  %p3809_p8 = pmov %p3808_p6 }
  0x55   : > { %v316_v0 = vld [vmem:[#allocation6 + $0xf8] sm:$0xff]  ;;  %v315_v2 = vld [vmem:[#allocation6 + $0xf0] sm:$0xff]  ;;  %v314_v4 = vld [vmem:[#allocation6 + $0xe8] sm:$0xff]  ;;  %vm501_vm0 = vcmask 130048   ;;  %s3195_s24 = smov 112   ;;  %s3196_s26 = smov 96  }
  0x56   : > { %3165 = vsyncadd (%p3809_p8), [#allocation7], 4294959104  ;;  %v300_v1 = vld [vmem:[#allocation6 + $0x78] sm:$0xff]  ;;  %2545 = vmatprep.subr.mxu0 %v316_v0  ;;  %v299_v3 = vld [vmem:[#allocation6 + $0x70] sm:$0xff]  ;;  %s2470_s9 = sshll.u32 %s3372_s30, 7  ;;  %s3197_s12 = smov 80  }
  0x57   : > { %2546 = vmatpush3.xpose.msra.mxu0 %v300_v1  ;;  %v298_v5 = vld [vmem:[#allocation6 + $0x68] sm:$0xff]  ;;  %v313_v6 = vld [vmem:[#allocation6 + $0xe0] sm:$0xff]  ;;  %v332_v9 = vld [vmem:[#allocation6 + $0x178] sm:$0xff]  ;;  %s3445_s10 = scalar_lea.vmem [#allocation10], %s2470_s9  ;;  %s3198_s14 = smov 64   ;;  %vm913_vm1 = vcmask 261248  }
  0x58   : > { %2547 = vmatprep.subr.mxu0 %v315_v2  ;;  %v3389_v7 = vld [vmem:[%s3378_s13] sm:$0xff]  ;;  %v312_v11 = vld [vmem:[#allocation6 + $0xd8] sm:$0xff]  ;;  %2681 = vmatprep.subr.mxu1 %v332_v9  ;;  %v330_v13 = vld [vmem:[#allocation6 + $0x168] sm:$0xff]  ;;  %s3199_s6 = smov 48   ;;  %s3200_s7 = smov 32   ;;  %vm1129_vm2 = vcmask 392448  }
  0x59   : > { %v297_v8 = vld [vmem:[#allocation6 + $0x60] sm:$0xff]  ;;  %2577 = vmatprep.mubr.f32.mxu0 %v3389_v7  ;;  %v331_v10 = vld [vmem:[#allocation6 + $0x170] sm:$0xff]  ;;  %2713 = vmatprep.mubr.f32.mxu1 %v3389_v7  ;;  %v296_v12 = vld [vmem:[#allocation6 + $0x58] sm:$0xff]  ;;  %s3201_s28 = smov 16   ;;  %vm1345_vm3 = vcmask 523648   ;;  %vm1561_vm4 = vcmask 654848  }
  0x5a   : > { %2682 = vmatpush3.xpose.msra.mxu1 %v332_v9  ;;  %v311_v14 = vld [vmem:[#allocation6 + $0xd0] sm:$0xff]  ;;  %v329_v16 = vld [vmem:[#allocation6 + $0x160] sm:$0xff]  ;;  %v310_v17 = vld [vmem:[#allocation6 + $0xc8] sm:$0xff]  ;;  %vm1777_vm5 = vcmask 786048   ;;  %vm1993_vm6 = vcmask 917248   ;;  %vm2209_vm7 = vcmask 1048448  }
  0x5b   : > { %2548 = vmatpush3.xpose.msra.mxu0 %v299_v3  ;;  %2683 = vmatprep.subr.mxu1 %v331_v10  ;;  %v295_v15 = vld [vmem:[#allocation6 + $0x50] sm:$0xff]  ;;  %v294_v18 = vld [vmem:[#allocation6 + $0x48] sm:$0xff]  ;;  %v328_v19 = vld [vmem:[#allocation6 + $0x158] sm:$0xff]  ;;  %s2544_s11 = sshll.u32 %s3257_s22, 11  ;;  %s2333_s17 = sshll.u32 %s3445_s10, 4  ;;  %s3705_s17 = int_to_ptr.vmem [resolvable:$true] %s2333_s17 }
  0x5c   : > { %2549 = vmatprep.subr.mxu0 %v314_v4  ;;  %v309_v20 = vld [vmem:[#allocation6 + $0xc0] sm:$0xff]  ;;  %v327_v22 = vld [vmem:[#allocation6 + $0x150] sm:$0xff]  ;;  %v308_v23 = vld [vmem:[#allocation6 + $0xb8] sm:$0xff]  ;;  %p3810_p2 = scmp.ne.s32.totalorder %s3803_s23, 0  ;;  %s3202_s9 = smov [#allocation10]  }
  0x5d   : > { %v293_v21 = vld [vmem:[#allocation6 + $0x40] sm:$0xff]  ;;  %v292_v24 = vld [vmem:[#allocation6 + $0x38] sm:$0xff]  ;;  %v326_v25 = vld [vmem:[#allocation6 + $0x148] sm:$0xff] }
  0x5e   : > { %2684 = vmatpush3.xpose.msra.mxu1 %v331_v10  ;;  %v307_v26 = vld [vmem:[#allocation6 + $0xb0] sm:$0xff]  ;;  %v325_v28 = vld [vmem:[#allocation6 + $0x140] sm:$0xff]  ;;  %v306_v29 = vld [vmem:[#allocation6 + $0xa8] sm:$0xff] }
  0x5f   : > { %2550 = vmatpush3.xpose.msra.mxu0 %v298_v5  ;;  %2685 = vmatprep.subr.mxu1 %v330_v13  ;;  %v291_v27 = vld [vmem:[#allocation6 + $0x30] sm:$0xff]  ;;  %v290_v30 = vld [vmem:[#allocation6 + $0x28] sm:$0xff]  ;;  %v324_v31 = vld [vmem:[#allocation6 + $0x138] sm:$0xff] }
  0x60   : > { %2551 = vmatprep.subr.mxu0 %v313_v6  ;;  %v305_v32 = vld [vmem:[#allocation6 + $0xa0] sm:$0xff]  ;;  %v323_v34 = vld [vmem:[#allocation6 + $0x130] sm:$0xff]  ;;  %v304_v35 = vld [vmem:[#allocation6 + $0x98] sm:$0xff] }
  0x61   : > { %v289_v33 = vld [vmem:[#allocation6 + $0x20] sm:$0xff]  ;;  %v288_v36 = vld [vmem:[#allocation6 + $0x18] sm:$0xff]  ;;  %v322_v37 = vld [vmem:[#allocation6 + $0x128] sm:$0xff] }
  0x62   : > { %2686 = vmatpush3.xpose.msra.mxu1 %v330_v13  ;;  %v303_v38 = vld [vmem:[#allocation6 + $0x90] sm:$0xff]  ;;  %v321_v40 = vld [vmem:[#allocation6 + $0x120] sm:$0xff]  ;;  %v302_v41 = vld [vmem:[#allocation6 + $0x88] sm:$0xff] }
  0x63   : > { %2552 = vmatpush3.xpose.msra.mxu0 %v297_v8  ;;  %2687 = vmatprep.subr.mxu1 %v329_v16  ;;  %v287_v39 = vld [vmem:[#allocation6 + $0x10] sm:$0xff]  ;;  %v286_v42 = vld [vmem:[#allocation6 + $0x8] sm:$0xff]  ;;  %v320_v43 = vld [vmem:[#allocation6 + $0x118] sm:$0xff] }
  0x64   : > { %2553 = vmatprep.subr.mxu0 %v312_v11  ;;  %v301_v44 = vld [vmem:[#allocation6 + $0x80] sm:$0xff]  ;;  %v319_v46 = vld [vmem:[#allocation6 + $0x110] sm:$0xff]  ;;  %v284_v47 = vld [vmem:[%s3378_s13 + $0x8] sm:$0xff]  ;;  %s3703_s13 = scalar_lea.hbm %s3793_s5, %s2544_s11 }
  0x65   : > { %v285_v45 = vld [vmem:[#allocation6] sm:$0xff]  ;;  %v318_v48 = vld [vmem:[#allocation6 + $0x108] sm:$0xff] }
  0x66   : > { %2688 = vmatpush3.xpose.msra.mxu1 %v329_v16  ;;  %v317_v49 = vld [vmem:[#allocation6 + $0x100] sm:$0xff] }
  0x67   : > { %2554 = vmatpush3.xpose.msra.mxu0 %v296_v12  ;;  %2689 = vmatprep.subr.mxu1 %v328_v19 }
  0x68   : > { %2555 = vmatprep.subr.mxu0 %v311_v14 }
  0x6a   : > { %2690 = vmatpush3.xpose.msra.mxu1 %v328_v19 }
  0x6b   : > { %2556 = vmatpush3.xpose.msra.mxu0 %v295_v15  ;;  %2691 = vmatprep.subr.mxu1 %v327_v22 }
  0x6c   : > { %2557 = vmatprep.subr.mxu0 %v310_v17 }
  0x6e   : > { %2692 = vmatpush3.xpose.msra.mxu1 %v327_v22 }
  0x6f   : > { %2558 = vmatpush3.xpose.msra.mxu0 %v294_v18  ;;  %2693 = vmatprep.subr.mxu1 %v326_v25 }
  0x70   : > { %2559 = vmatprep.subr.mxu0 %v309_v20 }
  0x72   : > { %2694 = vmatpush3.xpose.msra.mxu1 %v326_v25 }
  0x73   : > { %2560 = vmatpush3.xpose.msra.mxu0 %v293_v21  ;;  %2695 = vmatprep.subr.mxu1 %v325_v28 }
  0x74   : > { %2561 = vmatprep.subr.mxu0 %v308_v23 }
  0x76   : > { %2696 = vmatpush3.xpose.msra.mxu1 %v325_v28 }
  0x77   : > { %2562 = vmatpush3.xpose.msra.mxu0 %v292_v24  ;;  %2697 = vmatprep.subr.mxu1 %v324_v31 }
  0x78   : > { %2563 = vmatprep.subr.mxu0 %v307_v26 }
  0x7a   : > { %2698 = vmatpush3.xpose.msra.mxu1 %v324_v31 }
  0x7b   : > { %2564 = vmatpush3.xpose.msra.mxu0 %v291_v27  ;;  %2699 = vmatprep.subr.mxu1 %v323_v34 }
  0x7c   : > { %2565 = vmatprep.subr.mxu0 %v306_v29 }
  0x7e   : > { %2700 = vmatpush3.xpose.msra.mxu1 %v323_v34 }
  0x7f   : > { %2566 = vmatpush3.xpose.msra.mxu0 %v290_v30  ;;  %2701 = vmatprep.subr.mxu1 %v322_v37 }
  0x80   : > { %2567 = vmatprep.subr.mxu0 %v305_v32 }
  0x82   : > { %2702 = vmatpush3.xpose.msra.mxu1 %v322_v37 }
  0x83   : > { %2568 = vmatpush3.xpose.msra.mxu0 %v289_v33  ;;  %2703 = vmatprep.subr.mxu1 %v321_v40 }
  0x84   : > { %2569 = vmatprep.subr.mxu0 %v304_v35 }
  0x86   : > { %2704 = vmatpush3.xpose.msra.mxu1 %v321_v40 }
  0x87   : > { %2570 = vmatpush3.xpose.msra.mxu0 %v288_v36  ;;  %2705 = vmatprep.subr.mxu1 %v320_v43 }
  0x88   : > { %2571 = vmatprep.subr.mxu0 %v303_v38 }
  0x8a   : > { %2706 = vmatpush3.xpose.msra.mxu1 %v320_v43 }
  0x8b   : > { %2572 = vmatpush3.xpose.msra.mxu0 %v287_v39  ;;  %2707 = vmatprep.subr.mxu1 %v319_v46 }
  0x8c   : > { %2573 = vmatprep.subr.mxu0 %v302_v41 }
  0x8e   : > { %2708 = vmatpush3.xpose.msra.mxu1 %v319_v46 }
  0x8f   : > { %2574 = vmatpush3.xpose.msra.mxu0 %v286_v42  ;;  %2709 = vmatprep.subr.mxu1 %v318_v48 }
  0x90   : > { %2575 = vmatprep.subr.mxu0 %v301_v44 }
  0x92   : > { %2710 = vmatpush3.xpose.msra.mxu1 %v318_v48 }
  0x93   : > { %2576 = vmatpush3.xpose.msra.mxu0 %v285_v45  ;;  %2711 = vmatprep.subr.mxu1 %v317_v49 }
  0x96   : > { %2578 = vmatmul.mubr.f32.vlgmr.msra.gmra.mxu0 %v3389_v7  ;;  %2712 = vmatpush3.xpose.msra.mxu1 %v317_v49 }
  0x97   : > { %2579 = vmatprep.mubr.f32.mxu0 %v284_v47 }
  0x99   : > { %2714 = vmatmul.mubr.f32.vlgmr.msra.gmra.mxu1 %v284_v47 }
  0x9a   : > { %2580 = vmatmul.mubr.f32.gmra.mxu0 %v284_v47 }
 0x156   : > { %v3395_v50 = vpop.f32.mrf.mxu0 }
 0x157   : > { %2720 = vmatprep.mubr.msk.f32.mxu1 %vm501_vm0, %v3395_v50 }
 0x158   : > { %v3399_v51 = vpop.f32.mrf.mxu0 }
 0x159   : > { %702 = vrot.lane.b32.xlu1 %v3399_v51, %s3195_s24  ;;  %v3415_v54 = vpop.f32.mrf.mxu1 }
 0x15a   : > { %v3403_v52 = vpop.f32.mrf.mxu0 }
 0x15b   : > { %v3420_v55 = vpop.f32.mrf.mxu1 }
 0x15c   : > { %v3405_v53 = vpop.f32.mrf.mxu0 }
 0x15d   : > { %698 = vrot.lane.b32.xlu1 %v3395_v50, %s3195_s24  ;;  %2716 = vmatprep.subr.msk.mxu1 %vm501_vm0, %v3405_v53 }
 0x15e   : > { %2717 = vmatpush3.xpose.msk.msra.mxu1 %vm501_vm0, %v3405_v53 }
 0x15f   : > { %2718 = vmatprep.subr.msk.mxu1 %vm501_vm0, %v3399_v51 }
 0x162   : > { %2719 = vmatpush3.xpose.msk.msra.mxu1 %vm501_vm0, %v3399_v51 }
 0x163   : > { %2723 = vmatprep.subr.mxu1 %v3415_v54 }
 0x165   : > { %2721 = vmatmul.mubr.msk.f32.vlgmr.msra.gmra.mxu1 %vm501_vm0, %v3403_v52 }
 0x166   : > { %2724 = vmatpush3.msra.mxu1 %v3415_v54 }
 0x167   : > { %2725 = vmatprep.subr.mxu1 %v3420_v55 }
 0x168   : > { %2726 = vmatpush3.msra.mxu1 %v3420_v55 }
 0x1cb   : > { %v703_v9 = vpop.permute.xlu1 %702 }
 0x1cf   : > { %v699_v10 = vpop.permute.xlu1 %698 }
 0x225   : > { %v2722_v56 = vpop.f32.mrf.mxu1 }
 0x226   : > { %v590_v59 = vmul.f32 0.25, %v2722_v56 }
 0x227   : > { %v580_v57 = vpop.f32.mrf.mxu1 }
 0x228   : > { %v589_v58 = vmul.f32 0.25, %v580_v57  ;;  %v594_v61 = vsel %vm501_vm0, %v590_v59, -inf }
 0x22a   : > { %v591_v60 = vsel %vm501_vm0, %v589_v58, -inf }
 0x22b   : > { %592 = vmax.xlane.f32.xlu0 %v591_v60 }
 0x22f   : > { %595 = vmax.xlane.f32.xlu0 %v594_v61 }
 0x245   : > { %704 = vrot.lane.b32.xlu0 %v3405_v53, %s3195_s24 }
 0x249   : > { %700 = vrot.lane.b32.xlu0 %v3403_v52, %s3195_s24 }
 0x24d   : > { %916 = vrot.lane.b32.xlu0 %v3395_v50, %s3196_s26 }
 0x2b4   : > { %v593_v62 = vpop.xlane.xlu0 %592 }
 0x2b5   : > { %v597_v63 = vsub.f32 %v589_v58, %v593_v62 }
 0x2b7   : > { %v599_v2 = vmul.f32 1.442695, %v597_v63 }
 0x2b8   : > { %v596_v0 = vpop.xlane.xlu0 %595 }
 0x2b9   : > { %v598_v1 = vsub.f32 %v590_v59, %v596_v0 }
 0x2bb   : > { %v601_v3 = vmul.f32 1.442695, %v598_v1 }
 0x2bc   : > { %v705_v4 = vpop.permute.xlu0 %704 }
 0x2bd   : > { %2946 = vpow2.f32 %v601_v3  ;;  %2730 = vmatprep.subr.msk.mxu1 %vm501_vm0, %v705_v4 }
 0x2be   : > { %2948 = vpow2.f32 %v599_v2 }
 0x2c0   : > { %v701_v17 = vpop.permute.xlu0 %700 }
 0x2c4   : > { %v917_v19 = vpop.permute.xlu0 %916 }
 0x2ca   : > { %v2947_v5 = vpop.eup %2946 }
 0x2cb   : > { %v606_v6 = vsel %vm501_vm0, %v2947_v5, 0.0  ;;  %v2949_v7 = vpop.eup %2948 }
 0x2cc   : > { %607 = vadd.xlane.f32.xlu1 %v606_v6  ;;  %v603_v8 = vsel %vm501_vm0, %v2949_v7, 0.0 }
 0x2d0   : > { %604 = vadd.xlane.f32.xlu1 %v603_v8 }
 0x2e1   : > { %922 = vrot.lane.b32.xlu1 %v3405_v53, %s3196_s26 }
 0x2e5   : > { %920 = vrot.lane.b32.xlu1 %v3399_v51, %s3196_s26 }
 0x2e9   : > { %918 = vrot.lane.b32.xlu1 %v3403_v52, %s3196_s26 }
 0x355   : > { %v608_v11 = vpop.xlane.xlu1 %607 }
 0x356   : > { %2950 = vrcp.f32 %v608_v11 }
 0x359   : > { %v605_v12 = vpop.xlane.xlu1 %604 }
 0x35a   : > { %2952 = vrcp.f32 %v605_v12 }
 0x35d   : > { %v923_v18 = vpop.permute.xlu1 %922 }
 0x361   : > { %v921_v20 = vpop.permute.xlu1 %920 }
 0x363   : > { %v2951_v13 = vpop.eup %2950 }
 0x364   : > { %v612_v14 = vmul.f32 %v2951_v13, %v2947_v5 }
 0x365   : > { %v919_v21 = vpop.permute.xlu1 %918 }
 0x366   : > { %614 = vst.msk [vmem:[%s3445_s10 + $0x8] sm:$0xff] %vm501_vm0, %v612_v14 }
 0x367   : > { %v2953_v15 = vpop.eup %2952 }
 0x368   : > { %v610_v16 = vmul.f32 %v2953_v15, %v2949_v7 }
 0x36a   : > { %613 = vst.msk [vmem:[%s3445_s10] sm:$0xff] %vm501_vm0, %v610_v16  ;;  %2727 = vmatprep.mubr.msk.f32.mxu1 %vm501_vm0, %v610_v16 }
 0x36b   : > { %2728 = vmatmul.mubr.msk.f32.vlgmr.msra.gmra.mxu1 %vm501_vm0, %v612_v14 }
 0x36c   : > { %2731 = vmatpush3.xpose.msk.msra.mxu1 %vm501_vm0, %v705_v4  ;;  %2734 = vmatprep.mubr.msk.f32.mxu1 %vm501_vm0, %v699_v10 }
 0x36d   : > { %2732 = vmatprep.subr.msk.mxu1 %vm501_vm0, %v703_v9 }
 0x370   : > { %2733 = vmatpush3.xpose.msk.msra.mxu1 %vm501_vm0, %v703_v9 }
 0x371   : > { %2744 = vmatprep.subr.msk.mxu1 %vm501_vm0, %v923_v18 }
 0x373   : > { %2735 = vmatmul.mubr.msk.f32.vlgmr.msra.gmra.mxu1 %vm501_vm0, %v701_v17 }
 0x374   : > { %2745 = vmatpush3.xpose.msk.msra.mxu1 %vm501_vm0, %v923_v18  ;;  %2748 = vmatprep.mubr.msk.f32.mxu1 %vm501_vm0, %v917_v19 }
 0x375   : > { %2746 = vmatprep.subr.msk.mxu1 %vm501_vm0, %v921_v20 }
 0x378   : > { %2747 = vmatpush3.xpose.msk.msra.mxu1 %vm501_vm0, %v921_v20 }
 0x37b   : > { %2749 = vmatmul.mubr.msk.f32.vlgmr.msra.gmra.mxu1 %vm501_vm0, %v919_v21 }
 0x42b   : > { %v2729_v22 = vpop.f32.mrf.mxu1 }
 0x42c   : > { %697 = vst.msk [vmem:[#allocation2 + $0x8] sm:$0xff] %vm501_vm0, %v2729_v22 }
 0x42d   : > { %v687_v23 = vpop.f32.mrf.mxu1 }
 0x42e   : > { %696 = vst.msk [vmem:[#allocation2] sm:$0xff] %vm501_vm0, %v687_v23 }
 0x433   : > { %v3466_v24 = vpop.f32.mrf.mxu1 }
 0x435   : > { %v3468_v25 = vpop.f32.mrf.mxu1 }
 0x43b   : > { %v2750_v26 = vpop.f32.mrf.mxu1 }
 0x43c   : > { %v1008_v27 = vmul.f32 0.25, %v2750_v26 }
 0x43d   : > { %v998_v28 = vpop.f32.mrf.mxu1 }
 0x43e   : > { %v1007_v29 = vmul.f32 0.25, %v998_v28  ;;  %v1012_v30 = vsel %vm501_vm0, %v1008_v27, -inf }
 0x43f   : > { %1013 = vmax.xlane.f32.xlu1 %v1012_v30 }
 0x440   : > { %v1009_v31 = vsel %vm501_vm0, %v1007_v29, -inf }
 0x441   : > { %1010 = vmax.xlane.f32.xlu0 %v1009_v31 }
 0x450   : > { %1034 = vrot.lane.b32.xlu1 %v3420_v55, %s3196_s26 }
 0x454   : > { %1138 = vrot.lane.b32.xlu1 %v3405_v53, %s3197_s12 }
 0x458   : > { %1136 = vrot.lane.b32.xlu1 %v3399_v51, %s3197_s12 }
 0x45c   : > { %1354 = vrot.lane.b32.xlu1 %v3405_v53, %s3198_s14 }
 0x460   : > { %1352 = vrot.lane.b32.xlu1 %v3399_v51, %s3198_s14 }
 0x464   : > { %1350 = vrot.lane.b32.xlu1 %v3403_v52, %s3198_s14 }
 0x4c8   : > { %v1014_v32 = vpop.xlane.xlu1 %1013 }
 0x4c9   : > { %v1016_v33 = vsub.f32 %v1008_v27, %v1014_v32 }
 0x4ca   : > { %v1011_v34 = vpop.xlane.xlu0 %1010 }
 0x4cb   : > { %v1019_v35 = vmul.f32 1.442695, %v1016_v33  ;;  %v1015_v36 = vsub.f32 %v1007_v29, %v1011_v34 }
 0x4cc   : > { %v1035_v44 = vpop.permute.xlu1 %1034 }
 0x4cd   : > { %2954 = vpow2.f32 %v1019_v35  ;;  %v1017_v37 = vmul.f32 1.442695, %v1015_v36 }
 0x4cf   : > { %2956 = vpow2.f32 %v1017_v37 }
 0x4d0   : > { %v1139_v46 = vpop.permute.xlu1 %1138 }
 0x4d4   : > { %v1137_v57 = vpop.permute.xlu1 %1136 }
 0x4d8   : > { %v1355_v60 = vpop.permute.xlu1 %1354 }
 0x4da   : > { %v2955_v38 = vpop.eup %2954 }
 0x4db   : > { %v1024_v39 = vsel %vm501_vm0, %v2955_v38, 0.0 }
 0x4dc   : > { %v2957_v40 = vpop.eup %2956  ;;  %1025 = vadd.xlane.f32.xlu0 %v1024_v39  ;;  %v1353_v62 = vpop.permute.xlu1 %1352 }
 0x4dd   : > { %v1021_v41 = vsel %vm501_vm0, %v2957_v40, 0.0 }
 0x4e0   : > { %1022 = vadd.xlane.f32.xlu0 %v1021_v41  ;;  %v1351_v63 = vpop.permute.xlu1 %1350 }
 0x4f6   : > { %1036 = vrot.lane.b32.xlu0 %v3415_v54, %s3196_s26 }
 0x4fa   : > { %1132 = vrot.lane.b32.xlu0 %v3395_v50, %s3197_s12 }
 0x4fe   : > { %1134 = vrot.lane.b32.xlu0 %v3403_v52, %s3197_s12 }
 0x502   : > { %1348 = vrot.lane.b32.xlu0 %v3395_v50, %s3198_s14 }
 0x565   : > { %v1026_v42 = vpop.xlane.xlu0 %1025 }
 0x566   : > { %2958 = vrcp.f32 %v1026_v42 }
 0x569   : > { %v1023_v43 = vpop.xlane.xlu0 %1022 }
 0x56a   : > { %2960 = vrcp.f32 %v1023_v43 }
 0x56d   : > { %v1037_v45 = vpop.permute.xlu0 %1036 }
 0x56e   : > { %2751 = vmatprep.subr.mxu1 %v1037_v45 }
 0x56f   : > { %2752 = vmatpush3.msra.mxu1 %v1037_v45 }
 0x570   : > { %2753 = vmatprep.subr.mxu1 %v1035_v44 }
 0x571   : > { %2754 = vmatpush3.msra.mxu1 %v1035_v44  ;;  %v1133_v56 = vpop.permute.xlu0 %1132 }
 0x572   : > { %2758 = vmatprep.subr.msk.mxu1 %vm501_vm0, %v1139_v46 }
 0x573   : > { %v2959_v47 = vpop.eup %2958 }
 0x574   : > { %v1030_v48 = vmul.f32 %v2959_v47, %v2955_v38 }
 0x575   : > { %v1135_v59 = vpop.permute.xlu0 %1134 }
 0x576   : > { %2490 = vst.msk [vmem:[%s3445_s10 + $0x28] sm:$0xff] %vm501_vm0, %v1030_v48 }
 0x577   : > { %v2961_v49 = vpop.eup %2960 }
 0x578   : > { %v1028_v58 = vmul.f32 %v2961_v49, %v2957_v40 }
 0x579   : > { %v1349_v61 = vpop.permute.xlu0 %1348 }
 0x57a   : > { %2489 = vst.msk [vmem:[%s3445_s10 + $0x20] sm:$0xff] %vm501_vm0, %v1028_v58  ;;  %2755 = vmatprep.mubr.msk.f32.mxu1 %vm501_vm0, %v1028_v58 }
 0x57b   : > { %2756 = vmatmul.mubr.msk.f32.vlgmr.msra.gmra.mxu1 %vm501_vm0, %v1030_v48  ;;  %v3577_v48 = vmul.f32 0.25, %v3466_v24 }
 0x57c   : > { %2759 = vmatpush3.xpose.msk.msra.mxu1 %vm501_vm0, %v1139_v46  ;;  %2762 = vmatprep.mubr.msk.f32.mxu1 %vm501_vm0, %v1133_v56 }
 0x57d   : > { %2760 = vmatprep.subr.msk.mxu1 %vm501_vm0, %v1137_v57  ;;  %v794_v56 = vsel %vm501_vm0, %v3577_v48, -inf }
 0x580   : > { %2761 = vmatpush3.xpose.msk.msra.mxu1 %vm501_vm0, %v1137_v57 }
 0x581   : > { %2772 = vmatprep.subr.msk.mxu1 %vm501_vm0, %v1355_v60 }
 0x583   : > { %2763 = vmatmul.mubr.msk.f32.vlgmr.msra.gmra.mxu1 %vm501_vm0, %v1135_v59 }
 0x584   : > { %2773 = vmatpush3.xpose.msk.msra.mxu1 %vm501_vm0, %v1355_v60  ;;  %2776 = vmatprep.mubr.msk.f32.mxu1 %vm501_vm0, %v1349_v61 }
 0x585   : > { %2774 = vmatprep.subr.msk.mxu1 %vm501_vm0, %v1353_v62 }
 0x588   : > { %2775 = vmatpush3.xpose.msk.msra.mxu1 %vm501_vm0, %v1353_v62 }
 0x58b   : > { %2777 = vmatmul.mubr.msk.f32.vlgmr.msra.gmra.mxu1 %vm501_vm0, %v1351_v63 }
 0x63b   : > { %v3512_v0 = vpop.f32.mrf.mxu1 }
 0x63d   : > { %v3514_v1 = vpop.f32.mrf.mxu1 }
 0x643   : > { %v3516_v2 = vpop.f32.mrf.mxu1 }
 0x645   : > { %v3518_v3 = vpop.f32.mrf.mxu1 }
 0x64b   : > { %v2778_v4 = vpop.f32.mrf.mxu1 }
 0x64c   : > { %v1440_v5 = vmul.f32 0.25, %v2778_v4  ;;  %v789_v4 = vmul.f32 0.25, %v3468_v25 }
 0x64d   : > { %v1430_v6 = vpop.f32.mrf.mxu1 }
 0x64e   : > { %v1439_v7 = vmul.f32 0.25, %v1430_v6  ;;  %v1444_v8 = vsel %vm501_vm0, %v1440_v5, -inf  ;;  %v791_v6 = vsel %vm501_vm0, %v789_v4, -inf }
 0x64f   : > { %1445 = vmax.xlane.f32.xlu1 %v1444_v8 }
 0x650   : > { %v1441_v9 = vsel %vm501_vm0, %v1439_v7, -inf }
 0x651   : > { %1442 = vmax.xlane.f32.xlu0 %v1441_v9 }
 0x660   : > { %1466 = vrot.lane.b32.xlu1 %v3420_v55, %s3198_s14 }
 0x664   : > { %1570 = vrot.lane.b32.xlu1 %v3405_v53, %s3199_s6 }
 0x668   : > { %1568 = vrot.lane.b32.xlu1 %v3399_v51, %s3199_s6 }
 0x66c   : > { %1786 = vrot.lane.b32.xlu1 %v3405_v53, %s3200_s7 }
 0x670   : > { %1784 = vrot.lane.b32.xlu1 %v3399_v51, %s3200_s7 }
 0x674   : > { %1782 = vrot.lane.b32.xlu1 %v3403_v52, %s3200_s7 }
 0x6d8   : > { %v1446_v10 = vpop.xlane.xlu1 %1445 }
 0x6d9   : > { %v1448_v11 = vsub.f32 %v1440_v5, %v1446_v10  ;;  %v1223_v5 = vmul.f32 0.25, %v3518_v3 }
 0x6da   : > { %v1443_v12 = vpop.xlane.xlu0 %1442 }
 0x6db   : > { %v1451_v13 = vmul.f32 1.442695, %v1448_v11  ;;  %v1447_v14 = vsub.f32 %v1439_v7, %v1443_v12  ;;  %v1224_v7 = vmul.f32 0.25, %v3516_v2  ;;  %v1225_v8 = vsel %vm501_vm0, %v1223_v5, -inf }
 0x6dc   : > { %v1467_v22 = vpop.permute.xlu1 %1466 }
 0x6dd   : > { %2962 = vpow2.f32 %v1451_v13  ;;  %v1449_v15 = vmul.f32 1.442695, %v1447_v14  ;;  %v1228_v10 = vsel %vm501_vm0, %v1224_v7, -inf }
 0x6df   : > { %2964 = vpow2.f32 %v1449_v15 }
 0x6e0   : > { %v1571_v26 = vpop.permute.xlu1 %1570 }
 0x6e4   : > { %v1569_v31 = vpop.permute.xlu1 %1568 }
 0x6e8   : > { %v1787_v34 = vpop.permute.xlu1 %1786 }
 0x6ea   : > { %v2963_v16 = vpop.eup %2962 }
 0x6eb   : > { %v1456_v17 = vsel %vm501_vm0, %v2963_v16, 0.0 }
 0x6ec   : > { %v2965_v18 = vpop.eup %2964  ;;  %1457 = vadd.xlane.f32.xlu0 %v1456_v17  ;;  %v1785_v36 = vpop.permute.xlu1 %1784 }
 0x6ed   : > { %v1453_v19 = vsel %vm501_vm0, %v2965_v18, 0.0 }
 0x6f0   : > { %1454 = vadd.xlane.f32.xlu0 %v1453_v19  ;;  %v1783_v37 = vpop.permute.xlu1 %1782 }
 0x706   : > { %1468 = vrot.lane.b32.xlu0 %v3415_v54, %s3198_s14 }
 0x70a   : > { %1564 = vrot.lane.b32.xlu0 %v3395_v50, %s3199_s6 }
 0x70e   : > { %1566 = vrot.lane.b32.xlu0 %v3403_v52, %s3199_s6 }
 0x712   : > { %1780 = vrot.lane.b32.xlu0 %v3395_v50, %s3200_s7 }
 0x775   : > { %v1458_v20 = vpop.xlane.xlu0 %1457 }
 0x776   : > { %2966 = vrcp.f32 %v1458_v20 }
 0x779   : > { %v1455_v21 = vpop.xlane.xlu0 %1454 }
 0x77a   : > { %2968 = vrcp.f32 %v1455_v21 }
 0x77d   : > { %v1469_v23 = vpop.permute.xlu0 %1468 }
 0x77e   : > { %2779 = vmatprep.subr.mxu1 %v1469_v23 }
 0x77f   : > { %2780 = vmatpush3.msra.mxu1 %v1469_v23 }
 0x780   : > { %2781 = vmatprep.subr.mxu1 %v1467_v22 }
 0x781   : > { %2782 = vmatpush3.msra.mxu1 %v1467_v22  ;;  %v1565_v30 = vpop.permute.xlu0 %1564 }
 0x782   : > { %2786 = vmatprep.subr.msk.mxu1 %vm501_vm0, %v1571_v26 }
 0x783   : > { %v2967_v27 = vpop.eup %2966 }
 0x784   : > { %v1462_v28 = vmul.f32 %v2967_v27, %v2963_v16 }
 0x785   : > { %v1567_v33 = vpop.permute.xlu0 %1566 }
 0x786   : > { %2506 = vst.msk [vmem:[%s3445_s10 + $0x48] sm:$0xff] %vm501_vm0, %v1462_v28 }
 0x787   : > { %v2969_v29 = vpop.eup %2968 }
 0x788   : > { %v1460_v32 = vmul.f32 %v2969_v29, %v2965_v18 }
 0x789   : > { %v1781_v35 = vpop.permute.xlu0 %1780 }
 0x78a   : > { %2505 = vst.msk [vmem:[%s3445_s10 + $0x40] sm:$0xff] %vm501_vm0, %v1460_v32  ;;  %2783 = vmatprep.mubr.msk.f32.mxu1 %vm501_vm0, %v1460_v32 }
 0x78b   : > { %2784 = vmatmul.mubr.msk.f32.vlgmr.msra.gmra.mxu1 %vm501_vm0, %v1462_v28 }
 0x78c   : > { %2787 = vmatpush3.xpose.msk.msra.mxu1 %vm501_vm0, %v1571_v26  ;;  %2790 = vmatprep.mubr.msk.f32.mxu1 %vm501_vm0, %v1565_v30 }
 0x78d   : > { %2788 = vmatprep.subr.msk.mxu1 %vm501_vm0, %v1569_v31 }
 0x790   : > { %2789 = vmatpush3.xpose.msk.msra.mxu1 %vm501_vm0, %v1569_v31 }
 0x791   : > { %2800 = vmatprep.subr.msk.mxu1 %vm501_vm0, %v1787_v34 }
 0x793   : > { %2791 = vmatmul.mubr.msk.f32.vlgmr.msra.gmra.mxu1 %vm501_vm0, %v1567_v33 }
 0x794   : > { %2801 = vmatpush3.xpose.msk.msra.mxu1 %vm501_vm0, %v1787_v34  ;;  %2804 = vmatprep.mubr.msk.f32.mxu1 %vm501_vm0, %v1781_v35 }
 0x795   : > { %2802 = vmatprep.subr.msk.mxu1 %vm501_vm0, %v1785_v36 }
 0x798   : > { %2803 = vmatpush3.xpose.msk.msra.mxu1 %vm501_vm0, %v1785_v36 }
 0x79b   : > { %2805 = vmatmul.mubr.msk.f32.vlgmr.msra.gmra.mxu1 %vm501_vm0, %v1783_v37 }
 0x84b   : > { %v3562_v38 = vpop.f32.mrf.mxu1 }
 0x84d   : > { %v3564_v39 = vpop.f32.mrf.mxu1 }
 0x853   : > { %v2792_v40 = vpop.f32.mrf.mxu1 }
 0x854   : > { %v3579_v49 = vmul.f32 0.25, %v2792_v40 }
 0x855   : > { %v1646_v41 = vpop.f32.mrf.mxu1 }
 0x856   : > { %v1660_v57 = vsel %vm501_vm0, %v3579_v49, -inf  ;;  %v1655_v9 = vmul.f32 0.25, %v1646_v41 }
 0x858   : > { %v1657_v11 = vsel %vm501_vm0, %v1655_v9, -inf }
 0x85b   : > { %v2806_v42 = vpop.f32.mrf.mxu1 }
 0x85c   : > { %v1872_v43 = vmul.f32 0.25, %v2806_v42 }
 0x85d   : > { %v1862_v44 = vpop.f32.mrf.mxu1 }
 0x85e   : > { %v1871_v45 = vmul.f32 0.25, %v1862_v44  ;;  %v1876_v46 = vsel %vm501_vm0, %v1872_v43, -inf }
 0x85f   : > { %1877 = vmax.xlane.f32.xlu1 %v1876_v46 }
 0x860   : > { %v1873_v47 = vsel %vm501_vm0, %v1871_v45, -inf }
 0x861   : > { %1874 = vmax.xlane.f32.xlu0 %v1873_v47 }
 0x870   : > { %1898 = vrot.lane.b32.xlu1 %v3420_v55, %s3200_s7 }
 0x874   : > { %2002 = vrot.lane.b32.xlu1 %v3405_v53, %s3201_s28 }
 0x878   : > { %2000 = vrot.lane.b32.xlu1 %v3399_v51, %s3201_s28 }
 0x87c   : > { %1998 = vrot.lane.b32.xlu1 %v3403_v52, %s3201_s28 }
 0x8a0   : > { %795 = vmax.xlane.f32.xlu1 %v794_v56 }
 0x8a4   : > { %1661 = vmax.xlane.f32.xlu1 %v1660_v57 }
 0x8e8   : > { %v1878_v53 = vpop.xlane.xlu1 %1877 }
 0x8e9   : > { %v1880_v58 = vsub.f32 %v1872_v43, %v1878_v53 }
 0x8ea   : > { %v1875_v59 = vpop.xlane.xlu0 %1874 }
 0x8eb   : > { %v1883_v51 = vmul.f32 1.442695, %v1880_v58  ;;  %v1879_v60 = vsub.f32 %v1871_v45, %v1875_v59 }
 0x8ec   : > { %v1899_v3 = vpop.permute.xlu1 %1898 }
 0x8ed   : > { %2970 = vpow2.f32 %v1883_v51  ;;  %v1881_v52 = vmul.f32 1.442695, %v1879_v60 }
 0x8ef   : > { %2972 = vpow2.f32 %v1881_v52 }
 0x8f0   : > { %v2003_v2 = vpop.permute.xlu1 %2002 }
 0x8f4   : > { %v2001_v18 = vpop.permute.xlu1 %2000 }
 0x8f8   : > { %v1999_v19 = vpop.permute.xlu1 %1998 }
 0x8fa   : > { %v2971_v24 = vpop.eup %2970 }
 0x8fb   : > { %v1888_v61 = vsel %vm501_vm0, %v2971_v24, 0.0 }
 0x8fc   : > { %v2973_v62 = vpop.eup %2972  ;;  %1889 = vadd.xlane.f32.xlu0 %v1888_v61 }
 0x8fd   : > { %v1885_v63 = vsel %vm501_vm0, %v2973_v62, 0.0 }
 0x900   : > { %1886 = vadd.xlane.f32.xlu0 %v1885_v63 }
 0x916   : > { %1900 = vrot.lane.b32.xlu0 %v3415_v54, %s3200_s7 }
 0x91a   : > { %1996 = vrot.lane.b32.xlu0 %v3395_v50, %s3201_s28 }
 0x929   : > { %v796_v22 = vpop.xlane.xlu1 %795 }
 0x92a   : > { %v798_v23 = vsub.f32 %v3577_v48, %v796_v22 }
 0x92c   : > { %v801_v28 = vmul.f32 1.442695, %v798_v23 }
 0x92d   : > { %v1662_v30 = vpop.xlane.xlu1 %1661 }
 0x92e   : > { %v1664_v34 = vsub.f32 %v3579_v49, %v1662_v30 }
 0x930   : > { %v1667_v41 = vmul.f32 1.442695, %v1664_v34 }
 0x939   : > { %792 = vmax.xlane.f32.xlu0 %v791_v6 }
 0x93d   : > { %1226 = vmax.xlane.f32.xlu0 %v1225_v8 }
 0x941   : > { %1229 = vmax.xlane.f32.xlu0 %v1228_v10 }
 0x945   : > { %1658 = vmax.xlane.f32.xlu0 %v1657_v11 }
 0x985   : > { %v1890_v50 = vpop.xlane.xlu0 %1889 }
 0x986   : > { %2974 = vrcp.f32 %v1890_v50 }
 0x989   : > { %v1887_v25 = vpop.xlane.xlu0 %1886 }
 0x98a   : > { %2976 = vrcp.f32 %v1887_v25 }
 0x98b   : > { %2978 = vpow2.f32 %v801_v28 }
 0x98d   : > { %v1901_v12 = vpop.permute.xlu0 %1900 }
 0x98e   : > { %2807 = vmatprep.subr.mxu1 %v1901_v12 }
 0x98f   : > { %2808 = vmatpush3.msra.mxu1 %v1901_v12 }
 0x990   : > { %2809 = vmatprep.subr.mxu1 %v1899_v3 }
 0x991   : > { %2810 = vmatpush3.msra.mxu1 %v1899_v3  ;;  %v1997_v17 = vpop.permute.xlu0 %1996 }
 0x992   : > { %2814 = vmatprep.subr.msk.mxu1 %vm501_vm0, %v2003_v2 }
 0x993   : > { %v2975_v13 = vpop.eup %2974 }
 0x994   : > { %v1894_v14 = vmul.f32 %v2975_v13, %v2971_v24 }
 0x996   : > { %2522 = vst.msk [vmem:[%s3445_s10 + $0x68] sm:$0xff] %vm501_vm0, %v1894_v14 }
 0x997   : > { %v2977_v15 = vpop.eup %2976 }
 0x998   : > { %v1892_v16 = vmul.f32 %v2977_v15, %v2973_v62  ;;  %v2979_v49 = vpop.eup %2978 }
 0x999   : > { %v806_v53 = vsel %vm501_vm0, %v2979_v49, 0.0 }
 0x99a   : > { %2521 = vst.msk [vmem:[%s3445_s10 + $0x60] sm:$0xff] %vm501_vm0, %v1892_v16  ;;  %2811 = vmatprep.mubr.msk.f32.mxu1 %vm501_vm0, %v1892_v16 }
 0x99b   : > { %2812 = vmatmul.mubr.msk.f32.vlgmr.msra.gmra.mxu1 %vm501_vm0, %v1894_v14 }
 0x99c   : > { %2815 = vmatpush3.xpose.msk.msra.mxu1 %vm501_vm0, %v2003_v2  ;;  %2818 = vmatprep.mubr.msk.f32.mxu1 %vm501_vm0, %v1997_v17 }
 0x99d   : > { %2816 = vmatprep.subr.msk.mxu1 %vm501_vm0, %v2001_v18 }
 0x9a0   : > { %2817 = vmatpush3.xpose.msk.msra.mxu1 %vm501_vm0, %v2001_v18 }
 0x9a3   : > { %2819 = vmatmul.mubr.msk.f32.vlgmr.msra.gmra.mxu1 %vm501_vm0, %v1999_v19 }
 0x9c2   : > { %v793_v20 = vpop.xlane.xlu0 %792 }
 0x9c3   : > { %v797_v27 = vsub.f32 %v789_v4, %v793_v20 }
 0x9c5   : > { %v799_v31 = vmul.f32 1.442695, %v797_v27 }
 0x9c6   : > { %v1227_v21 = vpop.xlane.xlu0 %1226 }
 0x9c7   : > { %v1231_v32 = vsub.f32 %v1223_v5, %v1227_v21  ;;  %2980 = vpow2.f32 %v799_v31 }
 0x9c9   : > { %v1233_v36 = vmul.f32 1.442695, %v1231_v32 }
 0x9ca   : > { %v1230_v26 = vpop.xlane.xlu0 %1229 }
 0x9cb   : > { %v1232_v29 = vsub.f32 %v1224_v7, %v1230_v26 }
 0x9cd   : > { %v1235_v35 = vmul.f32 1.442695, %v1232_v29 }
 0x9ce   : > { %v1659_v33 = vpop.xlane.xlu0 %1658 }
 0x9cf   : > { %v1663_v37 = vsub.f32 %v1655_v9, %v1659_v33  ;;  %2982 = vpow2.f32 %v1235_v35 }
 0x9d0   : > { %2984 = vpow2.f32 %v1233_v36 }
 0x9d1   : > { %v1665_v42 = vmul.f32 1.442695, %v1663_v37  ;;  %2986 = vpow2.f32 %v1667_v41 }
 0x9d3   : > { %2988 = vpow2.f32 %v1665_v42 }
 0x9d4   : > { %v2981_v57 = vpop.eup %2980 }
 0x9d5   : > { %v803_v59 = vsel %vm501_vm0, %v2981_v57, 0.0 }
 0x9dc   : > { %v2983_v58 = vpop.eup %2982 }
 0x9dd   : > { %v3620_v51 = vpop.eup %2984  ;;  %v1240_v60 = vsel %vm501_vm0, %v2983_v58, 0.0 }
 0x9de   : > { %v3623_v52 = vpop.eup %2986  ;;  %v1237_v24 = vsel %vm501_vm0, %v3620_v51, 0.0 }
 0x9df   : > { %v1672_v62 = vsel %vm501_vm0, %v3623_v52, 0.0 }
 0x9e0   : > { %v3627_v61 = vpop.eup %2988 }
 0x9e1   : > { %v1669_v63 = vsel %vm501_vm0, %v3627_v61, 0.0 }
 0xa5b   : > { %v3612_v40 = vpop.f32.mrf.mxu1 }
 0xa5d   : > { %v3614_v43 = vpop.f32.mrf.mxu1 }
 0xa63   : > { %v2820_v44 = vpop.f32.mrf.mxu1 }
 0xa64   : > { %v2088_v45 = vmul.f32 0.25, %v2820_v44 }
 0xa65   : > { %v2078_v46 = vpop.f32.mrf.mxu1 }
 0xa66   : > { %v2087_v47 = vmul.f32 0.25, %v2078_v46  ;;  %v2092_v48 = vsel %vm501_vm0, %v2088_v45, -inf }
 0xa67   : > { %2093 = vmax.xlane.f32.xlu1 %v2092_v48 }
 0xa68   : > { %v2089_v56 = vsel %vm501_vm0, %v2087_v47, -inf }
 0xa69   : > { %2090 = vmax.xlane.f32.xlu0 %v2089_v56 }
 0xa6b   : > { %807 = vadd.xlane.f32.xlu1 %v806_v53  ;;  %v344_v53 = vld [vmem:[#allocation8 + $0x58] sm:$0xff] }
 0xa6d   : > { %804 = vadd.xlane.f32.xlu0 %v803_v59  ;;  %v340_v59 = vld [vmem:[#allocation8 + $0x38] sm:$0xff] }
 0xa6f   : > { %1241 = vadd.xlane.f32.xlu1 %v1240_v60  ;;  %v338_v60 = vld [vmem:[#allocation8 + $0x28] sm:$0xff] }
 0xa71   : > { %1238 = vadd.xlane.f32.xlu0 %v1237_v24  ;;  %v336_v24 = vld [vmem:[#allocation8 + $0x18] sm:$0xff] }
 0xa73   : > { %1673 = vadd.xlane.f32.xlu1 %v1672_v62 }
 0xa75   : > { %1670 = vadd.xlane.f32.xlu0 %v1669_v63 }
 0xa84   : > { %818 = vrot.lane.b32.xlu1 %v3420_v55, %s3195_s24 }
 0xa88   : > { %1252 = vrot.lane.b32.xlu1 %v3415_v54, %s3197_s12 }
 0xa8b   : > { %820 = vrot.lane.b32.xlu0 %v3415_v54, %s3195_s24 }
 0xa8c   : > { %1250 = vrot.lane.b32.xlu1 %v3420_v55, %s3197_s12 }
 0xa8f   : > { %1684 = vrot.lane.b32.xlu0 %v3415_v54, %s3199_s6 }
 0xa90   : > { %1682 = vrot.lane.b32.xlu1 %v3420_v55, %s3199_s6 }
 0xaf0   : > { %v2094_v4 = vpop.xlane.xlu1 %2093 }
 0xaf1   : > { %v2096_v5 = vsub.f32 %v2088_v45, %v2094_v4 }
 0xaf2   : > { %v2091_v6 = vpop.xlane.xlu0 %2090 }
 0xaf3   : > { %v2099_v7 = vmul.f32 1.442695, %v2096_v5  ;;  %v2095_v8 = vsub.f32 %v2087_v47, %v2091_v6 }
 0xaf4   : > { %v808_v9 = vpop.xlane.xlu1 %807 }
 0xaf5   : > { %2990 = vpow2.f32 %v2099_v7  ;;  %v2097_v10 = vmul.f32 1.442695, %v2095_v8 }
 0xaf6   : > { %2992 = vrcp.f32 %v808_v9  ;;  %v805_v11 = vpop.xlane.xlu0 %804 }
 0xaf7   : > { %2994 = vpow2.f32 %v2097_v10 }
 0xaf8   : > { %2996 = vrcp.f32 %v805_v11  ;;  %v1242_v50 = vpop.xlane.xlu1 %1241 }
 0xaf9   : > { %2998 = vrcp.f32 %v1242_v50 }
 0xafa   : > { %v1239_v25 = vpop.xlane.xlu0 %1238 }
 0xafb   : > { %3000 = vrcp.f32 %v1239_v25 }
 0xafc   : > { %v1674_v3 = vpop.xlane.xlu1 %1673 }
 0xafd   : > { %3002 = vrcp.f32 %v1674_v3  ;;  %v334_v3 = vld [vmem:[#allocation8 + $0x8] sm:$0xff] }
 0xafe   : > { %v1671_v12 = vpop.xlane.xlu0 %1670 }
 0xaff   : > { %3004 = vrcp.f32 %v1671_v12  ;;  %v333_v12 = vld [vmem:[#allocation8] sm:$0xff] }
 0xb00   : > { %v819_v2 = vpop.permute.xlu1 %818 }
 0xb02   : > { %v2991_v13 = vpop.eup %2990  ;;  %v821_v14 = vpop.permute.xlu0 %820 }
 0xb03   : > { %v2993_v15 = vpop.eup %2992  ;;  %2737 = vmatprep.subr.mxu0 %v821_v14  ;;  %v2104_v16 = vsel %vm501_vm0, %v2991_v13, 0.0 }
 0xb04   : > { %v2995_v17 = vpop.eup %2994  ;;  %v812_v18 = vmul.f32 %v2993_v15, %v2979_v49  ;;  %2105 = vadd.xlane.f32.xlu1 %v2104_v16  ;;  %v1253_v19 = vpop.permute.xlu1 %1252  ;;  %2738 = vmatpush3.msra.mxu0 %v821_v14 }
 0xb05   : > { %v2997_v20 = vpop.eup %2996  ;;  %2739 = vmatprep.subr.mxu0 %v819_v2  ;;  %v2101_v21 = vsel %vm501_vm0, %v2995_v17, 0.0 }
 0xb06   : > { %v2999_v22 = vpop.eup %2998  ;;  %2482 = vst.msk [vmem:[%s3445_s10 + $0x18] sm:$0xff] %vm501_vm0, %v812_v18  ;;  %2102 = vadd.xlane.f32.xlu0 %v2101_v21  ;;  %2740 = vmatpush3.msra.mxu0 %v819_v2  ;;  %v810_v23 = vmul.f32 %v2997_v20, %v2981_v57  ;;  %v1685_v33 = vpop.permute.xlu0 %1684 }
 0xb07   : > { %2765 = vmatprep.subr.mxu0 %v1253_v19  ;;  %v1246_v26 = vmul.f32 %v2999_v22, %v2983_v58  ;;  %v343_v58 = vld [vmem:[#allocation8 + $0x50] sm:$0xff] }
 0xb08   : > { %v3001_v27 = vpop.eup %3000  ;;  %2481 = vst.msk [vmem:[%s3445_s10 + $0x10] sm:$0xff] %vm501_vm0, %v810_v23  ;;  %2741 = vmatprep.mubr.msk.f32.mxu0 %vm501_vm0, %v810_v23  ;;  %v1251_v28 = vpop.permute.xlu1 %1250 }
 0xb09   : > { %2742 = vmatmul.mubr.msk.f32.vlgmr.msra.gmra.mxu0 %vm501_vm0, %v812_v18  ;;  %v1244_v29 = vmul.f32 %v3001_v27, %v3620_v51  ;;  %2498 = vst.msk [vmem:[%s3445_s10 + $0x38] sm:$0xff] %vm501_vm0, %v1246_v26  ;;  %v339_v51 = vld [vmem:[#allocation8 + $0x30] sm:$0xff] }
 0xb0a   : > { %v3003_v30 = vpop.eup %3002  ;;  %2766 = vmatpush3.msra.mxu0 %v1253_v19 }
 0xb0b   : > { %2767 = vmatprep.subr.mxu0 %v1251_v28  ;;  %2497 = vst.msk [vmem:[%s3445_s10 + $0x30] sm:$0xff] %vm501_vm0, %v1244_v29  ;;  %2769 = vmatprep.mubr.msk.f32.mxu0 %vm501_vm0, %v1244_v29  ;;  %v1678_v31 = vmul.f32 %v3003_v30, %v3623_v52  ;;  %v337_v52 = vld [vmem:[#allocation8 + $0x20] sm:$0xff] }
 0xb0c   : > { %v3005_v32 = vpop.eup %3004  ;;  %2768 = vmatpush3.msra.mxu0 %v1251_v28  ;;  %v1683_v34 = vpop.permute.xlu1 %1682 }
 0xb0d   : > { %2793 = vmatprep.subr.mxu0 %v1685_v33  ;;  %2770 = vmatmul.mubr.msk.f32.vlgmr.msra.gmra.mxu0 %vm501_vm0, %v1246_v26  ;;  %v1676_v35 = vmul.f32 %v3005_v32, %v3627_v61  ;;  %2514 = vst.msk [vmem:[%s3445_s10 + $0x58] sm:$0xff] %vm501_vm0, %v1678_v31  ;;  %v335_v61 = vld [vmem:[#allocation8 + $0x10] sm:$0xff] }
 0xb0e   : > { %2794 = vmatpush3.msra.mxu0 %v1685_v33 }
 0xb0f   : > { %2795 = vmatprep.subr.mxu0 %v1683_v34  ;;  %2513 = vst.msk [vmem:[%s3445_s10 + $0x50] sm:$0xff] %vm501_vm0, %v1676_v35  ;;  %2797 = vmatprep.mubr.msk.f32.mxu0 %vm501_vm0, %v1676_v35 }
 0xb10   : > { %2796 = vmatpush3.msra.mxu0 %v1683_v34 }
 0xb11   : > { %2798 = vmatmul.mubr.msk.f32.vlgmr.msra.gmra.mxu0 %vm501_vm0, %v1678_v31 }
 0xb15   : > { %2114 = vrot.lane.b32.xlu1 %v3420_v55, %s3201_s28 }
 0xb1c   : > { %2116 = vrot.lane.b32.xlu0 %v3415_v54, %s3201_s28 }
 0xb8d   : > { %v2106_v36 = vpop.xlane.xlu1 %2105 }
 0xb8e   : > { %3006 = vrcp.f32 %v2106_v36 }
 0xb8f   : > { %v2103_v37 = vpop.xlane.xlu0 %2102 }
 0xb90   : > { %3008 = vrcp.f32 %v2103_v37 }
 0xb91   : > { %v2115_v42 = vpop.permute.xlu1 %2114 }
 0xb93   : > { %v2117_v41 = vpop.permute.xlu0 %2116 }
 0xb94   : > { %2821 = vmatprep.subr.mxu0 %v2117_v41 }
 0xb95   : > { %2822 = vmatpush3.msra.mxu0 %v2117_v41 }
 0xb96   : > { %2823 = vmatprep.subr.mxu0 %v2115_v42 }
 0xb97   : > { %2824 = vmatpush3.msra.mxu0 %v2115_v42 }
 0xb9b   : > { %v3007_v44 = vpop.eup %3006 }
 0xb9c   : > { %v2110_v45 = vmul.f32 %v3007_v44, %v2991_v13 }
 0xb9d   : > { %v3009_v46 = vpop.eup %3008 }
 0xb9e   : > { %v2108_v47 = vmul.f32 %v3009_v46, %v2995_v17  ;;  %2530 = vst.msk [vmem:[%s3445_s10 + $0x78] sm:$0xff] %vm501_vm0, %v2110_v45 }
 0xba0   : > { %2529 = vst.msk [vmem:[%s3445_s10 + $0x70] sm:$0xff] %vm501_vm0, %v2108_v47  ;;  %2825 = vmatprep.mubr.msk.f32.mxu0 %vm501_vm0, %v2108_v47 }
 0xba1   : > { %2826 = vmatmul.mubr.msk.f32.vlgmr.msra.gmra.mxu0 %vm501_vm0, %v2110_v45 }
 0xbc9   : > { %v2743_v54 = vpop.f32.mrf.mxu0 }
 0xbca   : > { %909 = vrot.lane.b32.xlu1 %v2743_v54, %s3201_s28 }
 0xbcb   : > { %v896_v55 = vpop.f32.mrf.mxu0 }
 0xbcc   : > { %907 = vrot.lane.b32.xlu0 %v896_v55, %s3201_s28 }
 0xbcd   : > { %v2771_v48 = vpop.f32.mrf.mxu0 }
 0xbce   : > { %1125 = vrot.lane.b32.xlu1 %v3512_v0, %s3200_s7  ;;  %v348_v0 = vld [vmem:[#allocation8 + $0x78] sm:$0xff] }
 0xbcf   : > { %v1328_v49 = vpop.f32.mrf.mxu0  ;;  %2828 = vmatprep.subr.mxu0 %v348_v0 }
 0xbd0   : > { %1123 = vrot.lane.b32.xlu0 %v3514_v1, %s3200_s7  ;;  %v347_v1 = vld [vmem:[#allocation8 + $0x70] sm:$0xff]  ;;  %2829 = vmatpush3.xpose.msra.mxu0 %v348_v0 }
 0xbd1   : > { %v2799_v56 = vpop.f32.mrf.mxu0  ;;  %2830 = vmatprep.subr.mxu0 %v347_v1 }
 0xbd2   : > { %1341 = vrot.lane.b32.xlu1 %v2771_v48, %s3199_s6 }
 0xbd3   : > { %v1760_v57 = vpop.f32.mrf.mxu0 }
 0xbd4   : > { %1339 = vrot.lane.b32.xlu0 %v1328_v49, %s3199_s6  ;;  %2831 = vmatpush3.xpose.msra.mxu0 %v347_v1 }
 0xbd6   : > { %1557 = vrot.lane.b32.xlu1 %v3562_v38, %s3198_s14  ;;  %v346_v38 = vld [vmem:[#allocation8 + $0x68] sm:$0xff] }
 0xbd7   : > { %2832 = vmatprep.subr.mxu0 %v346_v38 }
 0xbd8   : > { %1555 = vrot.lane.b32.xlu0 %v3564_v39, %s3198_s14  ;;  %v345_v39 = vld [vmem:[#allocation8 + $0x60] sm:$0xff]  ;;  %2833 = vmatpush3.xpose.msra.mxu0 %v346_v38 }
 0xbd9   : > { %2834 = vmatprep.subr.mxu0 %v345_v39 }
 0xbda   : > { %1773 = vrot.lane.b32.xlu1 %v2799_v56, %s3197_s12 }
 0xbdc   : > { %1771 = vrot.lane.b32.xlu0 %v1760_v57, %s3197_s12  ;;  %2835 = vmatpush3.xpose.msra.mxu0 %v345_v39  ;;  %s3094_s12 = sshll.u32 %s3202_s9, 4  ;;  %s3095_s12 = int_to_ptr.vmem [resolvable:$false] %s3094_s12 }
 0xbdd   : > { %2836 = vmatprep.subr.mxu0 %v344_v53  ;;  %s3096_s10 = scalar_lea.vmem %s3095_s12, 4096  ;;  %p3097_p13 = scmp.lt.s32.totalorder %s3705_s17, %s3095_s12 }
 0xbde   : > { %1989 = vrot.lane.b32.xlu1 %v3612_v40, %s3196_s26  ;;  %v342_v40 = vld [vmem:[#allocation8 + $0x48] sm:$0xff] }
 0xbe0   : > { %1987 = vrot.lane.b32.xlu0 %v3614_v43, %s3196_s26  ;;  %2837 = vmatpush3.xpose.msra.mxu0 %v344_v53  ;;  %v341_v43 = vld [vmem:[#allocation8 + $0x40] sm:$0xff]  ;;  %s3090_s26 = scalar_lea.vmem %s3705_s17, 2048 }
 0xbe1   : > { %2838 = vmatprep.subr.mxu0 %v343_v58  ;;  %p3091_p5 = scmp.ne.s32.totalorder %s3705_s17, %s3090_s26  ;;  %p3098_p0 = scmp.lt.s32.totalorder %s3096_s10, %s3090_s26 }
 0xbe3   : > { %p3092_p7 = pnand %p3091_p5, %p3810_p2  ;;  %p3099_p10 = por %p3098_p0, %p3097_p13 }
 0xbe4   : > { %2839 = vmatpush3.xpose.msra.mxu0 %v343_v58 }
 0xbe5   : > { %2840 = vmatprep.subr.mxu0 %v342_v40  ;;  %p3093_p12 = pneg %p3092_p7 }
 0xbe7   : > { %p3100_p3 = pnand %p3099_p10, %p3093_p12 }
 0xbe8   : > { %2841 = vmatpush3.xpose.msra.mxu0 %v342_v40 }
 0xbe9   : > { %2842 = vmatprep.subr.mxu0 %v341_v43 }
 0xbec   : > { %2843 = vmatpush3.xpose.msra.mxu0 %v341_v43 }
 0xbed   : > { %2844 = vmatprep.subr.mxu0 %v340_v59 }
 0xbf0   : > { %2845 = vmatpush3.xpose.msra.mxu0 %v340_v59 }
 0xbf1   : > { %2846 = vmatprep.subr.mxu0 %v339_v51 }
 0xbf4   : > { %2847 = vmatpush3.xpose.msra.mxu0 %v339_v51 }
 0xbf5   : > { %2848 = vmatprep.subr.mxu0 %v338_v60 }
 0xbf8   : > { %2849 = vmatpush3.xpose.msra.mxu0 %v338_v60 }
 0xbf9   : > { %2850 = vmatprep.subr.mxu0 %v337_v52 }
 0xbfc   : > { %2851 = vmatpush3.xpose.msra.mxu0 %v337_v52 }
 0xbfd   : > { %2852 = vmatprep.subr.mxu0 %v336_v24 }
 0xc00   : > { %2853 = vmatpush3.xpose.msra.mxu0 %v336_v24 }
 0xc01   : > { %2854 = vmatprep.subr.mxu0 %v335_v61 }
 0xc04   : > { %2855 = vmatpush3.xpose.msra.mxu0 %v335_v61 }
 0xc05   : > { %2856 = vmatprep.subr.mxu0 %v334_v3 }
 0xc08   : > { %2857 = vmatpush3.xpose.msra.mxu0 %v334_v3 }
 0xc09   : > { %2858 = vmatprep.subr.mxu0 %v333_v12 }
 0xc0c   : > { %2859 = vmatpush3.xpose.msra.mxu0 %v333_v12 }
 0xc3c   : > { %v910_v62 = vpop.permute.xlu1 %909 }
 0xc3d   : > { %915 = vst.msk [vmem:[#allocation2 + $0x8] sm:$0xff] %vm913_vm1, %v910_v62 }
 0xc3e   : > { %v908_v63 = vpop.permute.xlu0 %907 }
 0xc3f   : > { %914 = vst.msk [vmem:[#allocation2] sm:$0xff] %vm913_vm1, %v908_v63 }
 0xc40   : > { %v1126_v4 = vpop.permute.xlu1 %1125 }
 0xc41   : > { %1131 = vst.msk [vmem:[#allocation2 + $0x8] sm:$0xff] %vm1129_vm2, %v1126_v4 }
 0xc42   : > { %v1124_v5 = vpop.permute.xlu0 %1123 }
 0xc43   : > { %1130 = vst.msk [vmem:[#allocation2] sm:$0xff] %vm1129_vm2, %v1124_v5 }
 0xc44   : > { %v1342_v6 = vpop.permute.xlu1 %1341 }
 0xc45   : > { %1347 = vst.msk [vmem:[#allocation2 + $0x8] sm:$0xff] %vm1345_vm3, %v1342_v6 }
 0xc46   : > { %v1340_v7 = vpop.permute.xlu0 %1339 }
 0xc47   : > { %1346 = vst.msk [vmem:[#allocation2] sm:$0xff] %vm1345_vm3, %v1340_v7 }
 0xc48   : > { %v1558_v8 = vpop.permute.xlu1 %1557 }
 0xc49   : > { %1563 = vst.msk [vmem:[#allocation2 + $0x8] sm:$0xff] %vm1561_vm4, %v1558_v8 }
 0xc4a   : > { %v1556_v9 = vpop.permute.xlu0 %1555 }
 0xc4b   : > { %1562 = vst.msk [vmem:[#allocation2] sm:$0xff] %vm1561_vm4, %v1556_v9 }
 0xc4c   : > { %v1774_v10 = vpop.permute.xlu1 %1773 }
 0xc4d   : > { %1779 = vst.msk [vmem:[#allocation2 + $0x8] sm:$0xff] %vm1777_vm5, %v1774_v10 }
 0xc4e   : > { %v1772_v11 = vpop.permute.xlu0 %1771 }
 0xc4f   : > { %1778 = vst.msk [vmem:[#allocation2] sm:$0xff] %vm1777_vm5, %v1772_v11 }
 0xc50   : > { %v1990_v50 = vpop.permute.xlu1 %1989 }
 0xc51   : > { %1995 = vst.msk [vmem:[#allocation2 + $0x8] sm:$0xff] %vm1993_vm6, %v1990_v50 }
 0xc52   : > { %v1988_v25 = vpop.permute.xlu0 %1987 }
 0xc53   : > { %1994 = vst.msk [vmem:[#allocation2] sm:$0xff] %vm1993_vm6, %v1988_v25 }
 0xc61   : > { %v2827_v2 = vpop.f32.mrf.mxu0 }
 0xc62   : > { %2205 = vrot.lane.b32.xlu1 %v2827_v2, %s3195_s24 }
 0xc63   : > { %v2192_v13 = vpop.f32.mrf.mxu0 }
 0xc64   : > { %2203 = vrot.lane.b32.xlu0 %v2192_v13, %s3195_s24  ;;  %s2304_s24 = scalar_lea.sflag [#allocation11], %s3372_s30 }
 0xcd4   : > { %v2206_v14 = vpop.permute.xlu1 %2205 }
 0xcd5   : > { %2211 = vst.msk [vmem:[#allocation2 + $0x8] sm:$0xff] %vm2209_vm7, %v2206_v14 }
 0xcd6   : > { %v2204_v15 = vpop.permute.xlu0 %2203 }
 0xcd7   : > { %2210 = vst.msk [vmem:[#allocation2] sm:$0xff] %vm2209_vm7, %v2204_v15 }
 0xcdc   : > { %v2213_v17 = vld [vmem:[#allocation2 + $0x8] sm:$0xff] }
 0xcde   : > { %v2212_v16 = vld [vmem:[#allocation2] sm:$0xff] }
 0xcdf   : > { %2860 = vmatprep.mubr.f32.mxu0 %v2212_v16 }
 0xce0   : > { %2861 = vmatmul.mubr.f32.vlgmr.msra.gmra.mxu0 %v2213_v17 }
 0xce1   : > { %3103 = shalt.err (!%p3100_p3)
}
 0xce2   : > { %s3104_s14 = scalar_lea.hbm %s3703_s13, 2048  ;;  %s3108_s28 = scalar_lea.hbm %s3793_s5, 4096 }
 0xce3   : > { %p3105_p11 = scmp.ne.s32.totalorder %s3703_s13, %s3104_s14  ;;  %p3109_p4 = scmp.lt.s32.totalorder %s3703_s13, %s3793_s5 }
 0xce4   : > { %p3110_p6 = scmp.lt.s32.totalorder %s3108_s28, %s3104_s14 }
 0xce5   : > { %p3106_p9 = pnand %p3105_p11, %p3810_p2 }
 0xce6   : > { %p3111_p8 = por %p3110_p6, %p3109_p4 }
 0xce7   : > { %p3107_p1 = pneg %p3106_p9 }
 0xce9   : > { %p3112_p5 = pnand %p3111_p8, %p3107_p1 }
 0xceb   : > { %3115 = shalt.err (!%p3112_p5)
}
 0xcec   : > { %s3203_s29 = smov 128   ;;  %s3204_s26 = smov 8   ;;  %v2533_v18 = vld [vmem:[%s3791_s3] ss:$0 sm:$0xff] }
 0xced   : > { %2874 = dma.vmem_to_hbm [thread:$0]  (%p3810_p2), %s3705_s17, 2048, %s3703_s13, %s2304_s24, %s3203_s29, %s3203_s29, %s3204_s26  }
 0xcee   : > { %s275_s10 = scalar_lea.vmem [#allocation9], %s2466_s8  ;;  %s2543_s6 = sshll.u32 %s3257_s22, 8 }
 0xcef   : > { %s2317_s14 = sshll.u32 %s275_s10, 4  ;;  %s3744_s24 = scalar_lea.hbm %s3792_s4, %s2543_s6  ;;  %s3739_s14 = int_to_ptr.vmem [resolvable:$true] %s2317_s14 }
 0xcf0   : > { %s2299_s7 = scalar_lea.sflag [#allocation5], %s3372_s30  ;;  %s3116_s8 = scalar_lea.vmem %s3739_s14, 256 }
 0xcf1   : > { %p3117_p7 = scmp.ne.s32.totalorder %s3739_s14, %s3116_s8  ;;  %s3205_s22 = smov [#allocation9]  }
 0xcf2   : > { %s3120_s28 = sshll.u32 %s3205_s22, 4  ;;  %s3121_s28 = int_to_ptr.vmem [resolvable:$false] %s3120_s28 }
 0xcf3   : > { %p3118_p12 = pnand %p3117_p7, %p3810_p2  ;;  %s3122_s11 = scalar_lea.vmem %s3121_s28, 512 }
 0xcf4   : > { %p3123_p0 = scmp.lt.s32.totalorder %s3739_s14, %s3121_s28  ;;  %p3124_p10 = scmp.lt.s32.totalorder %s3122_s11, %s3116_s8 }
 0xcf5   : > { %p3119_p13 = pneg %p3118_p12 }
 0xcf6   : > { %p3125_p3 = por %p3124_p10, %p3123_p0 }
 0xcf8   : > { %p3126_p11 = pnand %p3125_p3, %p3119_p13 }
 0xda0   : > { %v2862_v19 = vpop.f32.mrf.mxu0 }
 0xda1   : > { %v2293_v20 = vadd.f32 %v2862_v19, %v2533_v18 }
 0xda2   : > { %v2287_v21 = vpop.f32.mrf.mxu0 }
 0xda3   : > { %2297 = vst [vmem:[%s275_s10 + $0x8] sm:$0xff] %v2293_v20  ;;  %v2288_v22 = vadd.f32 %v2533_v18, %v2287_v21 }
 0xda5   : > { %2296 = vst [vmem:[%s275_s10] sm:$0xff] %v2288_v22 }
 0xda6   : > { %3129 = shalt.err (!%p3126_p11)
}
 0xda7   : > { %s3130_s16 = scalar_lea.hbm %s3744_s24, 256  ;;  %s3134_s12 = scalar_lea.hbm %s3792_s4, 512 }
 0xda8   : > { %p3131_p9 = scmp.ne.s32.totalorder %s3744_s24, %s3130_s16  ;;  %p3135_p6 = scmp.lt.s32.totalorder %s3744_s24, %s3792_s4 }
 0xda9   : > { %p3136_p8 = scmp.lt.s32.totalorder %s3134_s12, %s3130_s16 }
 0xdaa   : > { %p3132_p1 = pnand %p3131_p9, %p3810_p2 }
 0xdab   : > { %p3137_p5 = por %p3136_p8, %p3135_p6 }
 0xdac   : > { %p3133_p4 = pneg %p3132_p1 }
 0xdae   : > { %p3138_p7 = pnand %p3137_p5, %p3133_p4 }
 0xdb0   : > { %3141 = shalt.err (!%p3138_p7)
}
 0xdb1   : > { %2873 = dma.vmem_to_hbm [thread:$0]  (%p3810_p2), %s3739_s14, 256, %s3744_s24, %s2299_s7, %s3203_s29, %s3203_s29, %s3204_s26  }
 0xdb2 PF: > { %s2348_s17 = sand.u32 1, %s3176_s18   ;;  %p3811_p12 = scmp.ne.s32.totalorder %s3800_s25, 0 }
 0xdb3   : > { %p3812_p13 = scmp.ge.s32.totalorder %s3188_s21, 2  ;;  %s2349_s13 = scalar_lea.sflag [#allocation5], %s2348_s17 }
 0xdb5   : > { %p2889_p0 = pnand %p3812_p13, %p3811_p12 }
 0xdb7   : > { %p2890_p10 = pneg %p2889_p0 }
 0xdb9   : > { %3167 = dma.done.wait (%p2890_p10), %s2349_s13, 256  }
 0xdba   : > { %3169 = vsyncadd (%p2890_p10), %s2349_s13, 4294967040  ;;  %s2358_s8 = scalar_lea.sflag [#allocation11], %s2348_s17 }
 0xdbb   : > { %3171 = dma.done.wait (%p2890_p10), %s2358_s8, 2048  }
 0xdbc   : > { %3173 = vsyncadd (%p2890_p10), %s2358_s8, 4294965248  ;;  %p23_p2 = scmp.ge.s32.totalorder %s3314_s15, 4   ;;  %s3813_s18 = smov %s3180_s19 }
 0xdbd   : > { %s3814_s19 = smov %s3184_s20  ;;  %s3815_s20 = smov %s3330_s27 }
 0xdbe   : > { %s3816_s21 = smov %s3314_s15  ;;  %25 = sbr.rel (!%p23_p2) target bundleno = 8 (0x8), region = 113 }
 0xdc3   :  { %2363 = vsyncpa [#allocation4], 1 }
 0xdc4   :  { %2365 = vsyncpa [#allocation4 + $0x1], 1 }
 0xdc5   :  { %2366 = vsyncpa [#allocation7], 1 }
 0xdc6   :  { %2367 = vsyncpa [#allocation5], 1 }
 0xdc7   :  { %2369 = vsyncpa [#allocation5 + $0x1], 1 }
 0xdc8   :  { %2370 = vsyncpa [#allocation11], 1 }
 0xdc9   :  { %2372 = vsyncpa [#allocation11 + $0x1], 1 }

</bundles_post_ra>
